<compile_context>
chip_gen: v7x
topology: tpu7x:2x2x1
jax: 0.10.0
libtpu: 0.0.40
codegen_flags: <defaults>
</compile_context>

<pallas_src>
import functools

import jax
import jax.numpy as jnp
from jax import lax
from jax.experimental import pallas as pl
from jax.experimental.pallas import tpu as pltpu


def vbpr_kernel(user_idx_ref, pos_idx_ref, neg_idx_ref,       # (B,1) int32 VMEM
                user_tab_ref, item_tab_ref, uvis_tab_ref,     # embedding tables
                w_ref, vis_pos_ref, vis_neg_ref,              # (V,F), (B,F), (B,F)
                out_ref):                                     # (2, B) f32
    f32 = jnp.float32
    B = out_ref.shape[1]
    num_users = user_tab_ref.shape[0]
    num_items = item_tab_ref.shape[0]

    # ---- fused embedding gathers via one-hot MXU matmuls -------------------
    user_oh = (lax.broadcasted_iota(jnp.int32, (B, num_users), 1)
               == user_idx_ref[...]).astype(f32)                      # (B, U)
    item_iota = lax.broadcasted_iota(jnp.int32, (B, num_items), 1)
    pos_oh = (item_iota == pos_idx_ref[...]).astype(f32)              # (B, I)
    neg_oh = (item_iota == neg_idx_ref[...]).astype(f32)              # (B, I)

    u    = jnp.dot(user_oh, user_tab_ref[...], preferred_element_type=f32)  # (B, D)
    uv   = jnp.dot(user_oh, uvis_tab_ref[...], preferred_element_type=f32)  # (B, V)
    ip   = jnp.dot(pos_oh,  item_tab_ref[...], preferred_element_type=f32)  # (B, D)
    ineg = jnp.dot(neg_oh,  item_tab_ref[...], preferred_element_type=f32)  # (B, D)

    # ---- restructured visual path: one lane-dense matmul -------------------
    # proj = user_visual_emb @ W : (B, V) @ (V, F) -> (B, F)
    proj = jnp.dot(uv, w_ref[...], preferred_element_type=f32)

    # ---- scores -------------------------------------------------------------
    pos = jnp.sum(u * ip,   axis=1) + jnp.sum(proj * vis_pos_ref[...], axis=1)
    neg = jnp.sum(u * ineg, axis=1) + jnp.sum(proj * vis_neg_ref[...], axis=1)

    out_ref[0, :] = pos.astype(out_ref.dtype)
    out_ref[1, :] = neg.astype(out_ref.dtype)


@jax.jit
def vbpr_forward(params, user_indices, item_pos_indices, item_neg_indices,
                 visual_features_pos, visual_features_neg):
    user_tab = params["user_embedding"]            # (U, D)
    item_tab = params["item_embedding"]            # (I, D)
    uvis_tab = params["user_visual_embedding"]     # (U, V)
    w = params["visual_item_embedding_w"]          # (V, F)  -- PyTorch Linear layout

    B = user_indices.shape[0]
    U, D = user_tab.shape
    I = item_tab.shape[0]
    V, F = w.shape

    u_idx = user_indices.reshape(B, 1).astype(jnp.int32)
    p_idx = item_pos_indices.reshape(B, 1).astype(jnp.int32)
    n_idx = item_neg_indices.reshape(B, 1).astype(jnp.int32)

    flops = int(2 * B * (U * D + U * V + 2 * I * D)   # one-hot gathers on MXU
                + 2 * B * V * F                       # visual projection
                + 4 * B * F + 4 * B * D + 2 * B)      # elementwise + reductions
    bytes_accessed = int(4 * (3 * B                   # indices
                              + U * D + I * D + U * V + V * F
                              + 2 * B * F             # visual features
                              + 2 * B))               # output

    vmem_spec = pl.BlockSpec(memory_space=pltpu.MemorySpace.VMEM)

    out = pl.pallas_call(
        vbpr_kernel,
        out_shape=jax.ShapeDtypeStruct((2, B), jnp.float32),
        in_specs=[vmem_spec] * 9,
        out_specs=vmem_spec,
        cost_estimate=pl.CostEstimate(flops=flops, transcendentals=0,
                                      bytes_accessed=bytes_accessed),
    )(u_idx, p_idx, n_idx,
      user_tab, item_tab, uvis_tab,
      w, visual_features_pos, visual_features_neg)

    return out[0], out[1]


def vbpr_reference(params, user_indices, item_pos_indices, item_neg_indices,
                   visual_features_pos, visual_features_neg):
    # Direct transcription of the PyTorch forward.
    user_emb = jnp.take(params["user_embedding"], user_indices, axis=0)
    item_pos_emb = jnp.take(params["item_embedding"], item_pos_indices, axis=0)
    item_neg_emb = jnp.take(params["item_embedding"], item_neg_indices, axis=0)
    user_visual_emb = jnp.take(params["user_visual_embedding"], user_indices, axis=0)
    visual_pos_emb = visual_features_pos @ params["visual_item_embedding_w"].T
    visual_neg_emb = visual_features_neg @ params["visual_item_embedding_w"].T
    pos = (user_emb * item_pos_emb).sum(1) + (user_visual_emb * visual_pos_emb).sum(1)
    neg = (user_emb * item_neg_emb).sum(1) + (user_visual_emb * visual_neg_emb).sum(1)
    return pos, neg


if __name__ == "__main__":
    # Shapes from the original module's top-level example.
    num_users = 1000
    num_items = 500
    num_visual_features = 2048
    embedding_dim = 20
    visual_embedding_dim = 10
    batch = 10

    key = jax.random.PRNGKey(0)
    k_ue, k_ie, k_w, k_uv, k_u, k_ip, k_in, k_vp, k_vn = jax.random.split(key, 9)

    params = {
        "user_embedding": jax.random.normal(
            k_ue, (num_users, embedding_dim), jnp.float32),
        "item_embedding": jax.random.normal(
            k_ie, (num_items, embedding_dim), jnp.float32),
        # PyTorch nn.Linear weight layout: (out_features, in_features) = (V, F).
        "visual_item_embedding_w": jax.random.normal(
            k_w, (visual_embedding_dim, num_visual_features), jnp.float32) * 0.05,
        "user_visual_embedding": jax.random.normal(
            k_uv, (num_users, visual_embedding_dim), jnp.float32),
    }

    user_indices = jax.random.randint(k_u, (batch,), 0, num_users)
    item_pos_indices = jax.random.randint(k_ip, (batch,), 0, num_items)
    item_neg_indices = jax.random.randint(k_in, (batch,), 0, num_items)
    visual_features_pos = jax.random.normal(
        k_vp, (batch, num_visual_features), jnp.float32)
    visual_features_neg = jax.random.normal(
        k_vn, (batch, num_visual_features), jnp.float32)

    pos_scores, neg_scores = vbpr_forward(
        params, user_indices, item_pos_indices, item_neg_indices,
        visual_features_pos, visual_features_neg)
    jax.block_until_ready((pos_scores, neg_scores))

    ref_pos, ref_neg = vbpr_reference(
        params, user_indices, item_pos_indices, item_neg_indices,
        visual_features_pos, visual_features_neg)

    assert pos_scores.shape == (batch,) and neg_scores.shape == (batch,)
    assert jnp.allclose(pos_scores, ref_pos, atol=1e-3, rtol=1e-3)
    assert jnp.allclose(neg_scores, ref_neg, atol=1e-3, rtol=1e-3)

    print("KERNEL_OK")
</pallas_src>

<mosaic_0001>
module attributes {stable_mosaic.version = 11 : i64} {
  func.func @vbpr_kernel(%arg0: memref<10x1xi32, #tpu.memory_space<vmem>>, %arg1: memref<10x1xi32, #tpu.memory_space<vmem>>, %arg2: memref<10x1xi32, #tpu.memory_space<vmem>>, %arg3: memref<1000x20xf32, #tpu.memory_space<vmem>>, %arg4: memref<500x20xf32, #tpu.memory_space<vmem>>, %arg5: memref<1000x10xf32, #tpu.memory_space<vmem>>, %arg6: memref<10x2048xf32, #tpu.memory_space<vmem>>, %arg7: memref<10x2048xf32, #tpu.memory_space<vmem>>, %arg8: memref<10x2048xf32, #tpu.memory_space<vmem>>, %arg9: memref<2x10xf32, #tpu.memory_space<vmem>>) attributes {dimension_semantics = [], scalar_prefetch = 0 : i64, scratch_operands = 0 : i64, tpu.core_type = #tpu.core_type<tc>} {
    %0 = tpu.iota {dimensions = array<i32: 1>} : vector<10x1000xi32>
    %c0 = arith.constant 0 : index
    %c0_0 = arith.constant 0 : index
    %1 = vector.load %arg0[%c0, %c0_0] : memref<10x1xi32, #tpu.memory_space<vmem>>, vector<10x1xi32>
    %2 = vector.broadcast %1 : vector<10x1xi32> to vector<10x1000xi32>
    %3 = arith.cmpi eq, %0, %2 : vector<10x1000xi32>
    %4 = arith.extui %3 : vector<10x1000xi1> to vector<10x1000xi32>
    %5 = arith.sitofp %4 : vector<10x1000xi32> to vector<10x1000xf32>
    %6 = tpu.iota {dimensions = array<i32: 1>} : vector<10x500xi32>
    %c0_1 = arith.constant 0 : index
    %c0_2 = arith.constant 0 : index
    %7 = vector.load %arg1[%c0_1, %c0_2] : memref<10x1xi32, #tpu.memory_space<vmem>>, vector<10x1xi32>
    %8 = vector.broadcast %7 : vector<10x1xi32> to vector<10x500xi32>
    %9 = arith.cmpi eq, %6, %8 : vector<10x500xi32>
    %10 = arith.extui %9 : vector<10x500xi1> to vector<10x500xi32>
    %11 = arith.sitofp %10 : vector<10x500xi32> to vector<10x500xf32>
    %c0_3 = arith.constant 0 : index
    %c0_4 = arith.constant 0 : index
    %12 = vector.load %arg2[%c0_3, %c0_4] : memref<10x1xi32, #tpu.memory_space<vmem>>, vector<10x1xi32>
    %13 = vector.broadcast %12 : vector<10x1xi32> to vector<10x500xi32>
    %14 = arith.cmpi eq, %6, %13 : vector<10x500xi32>
    %15 = arith.extui %14 : vector<10x500xi1> to vector<10x500xi32>
    %16 = arith.sitofp %15 : vector<10x500xi32> to vector<10x500xf32>
    %c0_5 = arith.constant 0 : index
    %c0_6 = arith.constant 0 : index
    %17 = vector.load %arg3[%c0_5, %c0_6] : memref<1000x20xf32, #tpu.memory_space<vmem>>, vector<1000x20xf32>
    %cst = arith.constant dense<0.000000e+00> : vector<10x20xf32>
    %18 = tpu.matmul %5, %17, %cst {dimension_numbers = #tpu.dot_dimension_numbers<[1], [0], [0], [1], [0, 0, 1, 1], [], []>} : vector<10x1000xf32>, vector<1000x20xf32>, vector<10x20xf32> -> vector<10x20xf32>
    %c0_7 = arith.constant 0 : index
    %c0_8 = arith.constant 0 : index
    %19 = vector.load %arg5[%c0_7, %c0_8] : memref<1000x10xf32, #tpu.memory_space<vmem>>, vector<1000x10xf32>
    %cst_9 = arith.constant dense<0.000000e+00> : vector<10x10xf32>
    %20 = tpu.matmul %5, %19, %cst_9 {dimension_numbers = #tpu.dot_dimension_numbers<[1], [0], [0], [1], [0, 0, 1, 1], [], []>} : vector<10x1000xf32>, vector<1000x10xf32>, vector<10x10xf32> -> vector<10x10xf32>
    %c0_10 = arith.constant 0 : index
    %c0_11 = arith.constant 0 : index
    %21 = vector.load %arg4[%c0_10, %c0_11] : memref<500x20xf32, #tpu.memory_space<vmem>>, vector<500x20xf32>
    %cst_12 = arith.constant dense<0.000000e+00> : vector<10x20xf32>
    %22 = tpu.matmul %11, %21, %cst_12 {dimension_numbers = #tpu.dot_dimension_numbers<[1], [0], [0], [1], [0, 0, 1, 1], [], []>} : vector<10x500xf32>, vector<500x20xf32>, vector<10x20xf32> -> vector<10x20xf32>
    %c0_13 = arith.constant 0 : index
    %c0_14 = arith.constant 0 : index
    %23 = vector.load %arg4[%c0_13, %c0_14] : memref<500x20xf32, #tpu.memory_space<vmem>>, vector<500x20xf32>
    %cst_15 = arith.constant dense<0.000000e+00> : vector<10x20xf32>
    %24 = tpu.matmul %16, %23, %cst_15 {dimension_numbers = #tpu.dot_dimension_numbers<[1], [0], [0], [1], [0, 0, 1, 1], [], []>} : vector<10x500xf32>, vector<500x20xf32>, vector<10x20xf32> -> vector<10x20xf32>
    %c0_16 = arith.constant 0 : index
    %c0_17 = arith.constant 0 : index
    %25 = vector.load %arg6[%c0_16, %c0_17] : memref<10x2048xf32, #tpu.memory_space<vmem>>, vector<10x2048xf32>
    %cst_18 = arith.constant dense<0.000000e+00> : vector<10x2048xf32>
    %26 = tpu.matmul %20, %25, %cst_18 {dimension_numbers = #tpu.dot_dimension_numbers<[1], [0], [0], [1], [0, 0, 1, 1], [], []>} : vector<10x10xf32>, vector<10x2048xf32>, vector<10x2048xf32> -> vector<10x2048xf32>
    %27 = arith.mulf %18, %22 : vector<10x20xf32>
    %cst_19 = arith.constant dense<0.000000e+00> : vector<10xf32>
    %28 = vector.multi_reduction <add>, %27, %cst_19 [1] : vector<10x20xf32> to vector<10xf32>
    %c0_20 = arith.constant 0 : index
    %c0_21 = arith.constant 0 : index
    %29 = vector.load %arg7[%c0_20, %c0_21] : memref<10x2048xf32, #tpu.memory_space<vmem>>, vector<10x2048xf32>
    %30 = arith.mulf %26, %29 : vector<10x2048xf32>
    %cst_22 = arith.constant dense<0.000000e+00> : vector<10xf32>
    %31 = vector.multi_reduction <add>, %30, %cst_22 [1] : vector<10x2048xf32> to vector<10xf32>
    %32 = arith.addf %28, %31 : vector<10xf32>
    %33 = arith.mulf %18, %24 : vector<10x20xf32>
    %cst_23 = arith.constant dense<0.000000e+00> : vector<10xf32>
    %34 = vector.multi_reduction <add>, %33, %cst_23 [1] : vector<10x20xf32> to vector<10xf32>
    %c0_24 = arith.constant 0 : index
    %c0_25 = arith.constant 0 : index
    %35 = vector.load %arg8[%c0_24, %c0_25] : memref<10x2048xf32, #tpu.memory_space<vmem>>, vector<10x2048xf32>
    %36 = arith.mulf %26, %35 : vector<10x2048xf32>
    %cst_26 = arith.constant dense<0.000000e+00> : vector<10xf32>
    %37 = vector.multi_reduction <add>, %36, %cst_26 [1] : vector<10x2048xf32> to vector<10xf32>
    %38 = arith.addf %34, %37 : vector<10xf32>
    %c0_27 = arith.constant 0 : index
    %c0_28 = arith.constant 0 : index
    %39 = vector.load %arg9[%c0_27, %c0_28] : memref<2x10xf32, #tpu.memory_space<vmem>>, vector<1x10xf32>
    %40 = vector.shape_cast %39 : vector<1x10xf32> to vector<10xf32>
    %41 = vector.shape_cast %32 : vector<10xf32> to vector<1x10xf32>
    tpu.vector_store %arg9[%c0_27, %c0_28], %41 {strides = array<i32>} : memref<2x10xf32, #tpu.memory_space<vmem>>, vector<1x10xf32>,
    %c1 = arith.constant 1 : index
    %c0_29 = arith.constant 0 : index
    %42 = vector.load %arg9[%c1, %c0_29] : memref<2x10xf32, #tpu.memory_space<vmem>>, vector<1x10xf32>
    %43 = vector.shape_cast %42 : vector<1x10xf32> to vector<10xf32>
    %44 = vector.shape_cast %38 : vector<10xf32> to vector<1x10xf32>
    tpu.vector_store %arg9[%c1, %c0_29], %44 {strides = array<i32>} : memref<2x10xf32, #tpu.memory_space<vmem>>, vector<1x10xf32>,
    return
  }
}

</mosaic_0001>

<bundles_post_ra>
// kernel: vbpr_forward.1
= control target key start
LH: loop header
LB: loop body
LE: loop exit
PB: predicated region body
PF: predicated region fallthrough
CT: control target
= control target key end

     0   :  { %v3288_v0 = vmov 0   ;;  %vm286_vm9 = vcmask 850944   ;;  %s5193_s0 = inlined_call_operand.vmem [shape: s32[10,1], index: 0, kind: input, shape index: {}]   ;;  %s5194_s3 = inlined_call_operand.vmem [shape: f32[1000,20], index: 3, kind: input, shape index: {}]   ;;  %s5195_s1 = inlined_call_operand.vmem [shape: s32[10,1], index: 1, kind: input, shape index: {}]   ;;  %s5196_s2 = inlined_call_operand.vmem [shape: s32[10,1], index: 2, kind: input, shape index: {}]   ;;  %s5197_s5 = inlined_call_operand.vmem [shape: f32[1000,10], index: 5, kind: input, shape index: {}]   ;;  %s5198_s4 = inlined_call_operand.vmem [shape: f32[500,20], index: 4, kind: input, shape index: {}]   ;;  %s5199_s6 = inlined_call_operand.vmem [shape: f32[10,2048], index: 6, kind: input, shape index: {}]   ;;  %s5200_s7 = inlined_call_operand.vmem [shape: f32[10,2048], index: 7, kind: input, shape index: {}]   ;;  %s5201_s8 = inlined_call_operand.vmem [shape: f32[10,2048], index: 8, kind: input, shape index: {}]   ;;  %s5202_s9 = inlined_call_operand.vmem [shape: f32[2,10], index: 9, kind: output, shape index: {}]  }
   0x1   :  { %3286 = vset.pattern.permute.xlu0 %v3288_v0  ;;  %v41_v1 = vld [vmem:[%s5193_s0] sm:$0xff]  ;;  %v42_v2 = vld [vmem:[%s5193_s0 + $0x8] sm:$0x3]  ;;  %3287 = vset.pattern.permute.xlu1 %v3288_v0  ;;  %v179_v14 = vld [vmem:[%s5194_s3 + $0x90] sm:$0xff] }
   0x2   :  { %44 = vperm.xlu0 %3286, %v41_v1   ;;  %v177_v3 = vld [vmem:[%s5194_s3 + $0x80] sm:$0xff]  ;;  %v178_v4 = vld [vmem:[%s5194_s3 + $0x88] sm:$0xff]  ;;  %v180_v17 = vld [vmem:[%s5194_s3 + $0x98] sm:$0xff] }
   0x3   :  { %v209_v5 = vld [vmem:[%s5194_s3 + $0x180] sm:$0xff]  ;;  %v2803_v6 = vpack.c.bf16 %v178_v4, %v177_v3  ;;  %v210_v7 = vld [vmem:[%s5194_s3 + $0x188] sm:$0xff]  ;;  %v211_v18 = vld [vmem:[%s5194_s3 + $0x190] sm:$0xff]  ;;  %v2807_v20 = vpack.c.bf16 %v180_v17, %v179_v14 }
   0x4   :  { %v161_v8 = vld [vmem:[%s5194_s3] sm:$0xff]  ;;  %v162_v9 = vld [vmem:[%s5194_s3 + $0x8] sm:$0xff]  ;;  %v2835_v10 = vpack.c.bf16 %v210_v7, %v209_v5  ;;  %v212_v19 = vld [vmem:[%s5194_s3 + $0x198] sm:$0xff] }
   0x5   :  { %v2805_v11 = vpack.c.bf16 %v162_v9, %v161_v8  ;;  %v193_v12 = vld [vmem:[%s5194_s3 + $0x100] sm:$0xff]  ;;  %v194_v13 = vld [vmem:[%s5194_s3 + $0x108] sm:$0xff]  ;;  %2804 = vmatprep.subr.bf16.mxu0 %v2803_v6  ;;  %v2839_v21 = vpack.c.bf16 %v212_v19, %v211_v18  ;;  %v163_v22 = vld [vmem:[%s5194_s3 + $0x10] sm:$0xff] }
   0x6   :  { %v98_v15 = vld [vmem:[%s5195_s1 + $0x8] sm:$0x3]  ;;  %v2837_v16 = vpack.c.bf16 %v194_v13, %v193_v12  ;;  %47 = vperm.xlu0 %3286, %v42_v2   ;;  %2836 = vmatprep.subr.bf16.mxu1 %v2835_v10  ;;  %v164_v23 = vld [vmem:[%s5194_s3 + $0x18] sm:$0xff]  ;;  %v195_v24 = vld [vmem:[%s5194_s3 + $0x110] sm:$0xff] }
   0x7   :  { %2806 = vmatpush3.bf16.msra.mxu0 %v2805_v11  ;;  %v2809_v25 = vpack.c.bf16 %v164_v23, %v163_v22  ;;  %v196_v26 = vld [vmem:[%s5194_s3 + $0x118] sm:$0xff]  ;;  %v181_v27 = vld [vmem:[%s5194_s3 + $0xa0] sm:$0xff]  ;;  %v182_v28 = vld [vmem:[%s5194_s3 + $0xa8] sm:$0xff] }
   0x8   :  { %2838 = vmatpush3.bf16.msra.mxu1 %v2837_v16  ;;  %2808 = vmatprep.subr.bf16.mxu0 %v2807_v20  ;;  %v2841_v29 = vpack.c.bf16 %v196_v26, %v195_v24  ;;  %v2811_v30 = vpack.c.bf16 %v182_v28, %v181_v27  ;;  %v213_v31 = vld [vmem:[%s5194_s3 + $0x1a0] sm:$0xff]  ;;  %v214_v32 = vld [vmem:[%s5194_s3 + $0x1a8] sm:$0xff]  ;;  %v183_v38 = vld [vmem:[%s5194_s3 + $0xb0] sm:$0xff] }
   0x9   :  { %2840 = vmatprep.subr.bf16.mxu1 %v2839_v21  ;;  %v165_v33 = vld [vmem:[%s5194_s3 + $0x20] sm:$0xff]  ;;  %v2843_v34 = vpack.c.bf16 %v214_v32, %v213_v31  ;;  %v166_v35 = vld [vmem:[%s5194_s3 + $0x28] sm:$0xff]  ;;  %v184_v39 = vld [vmem:[%s5194_s3 + $0xb8] sm:$0xff] }
   0xa   :  { %v197_v36 = vld [vmem:[%s5194_s3 + $0x120] sm:$0xff]  ;;  %v198_v37 = vld [vmem:[%s5194_s3 + $0x128] sm:$0xff]  ;;  %103 = vperm.xlu0 %3286, %v98_v15   ;;  %v215_v40 = vld [vmem:[%s5194_s3 + $0x1b0] sm:$0xff]  ;;  %v2813_v41 = vpack.c.bf16 %v166_v35, %v165_v33  ;;  %v2815_v46 = vpack.c.bf16 %v184_v39, %v183_v38 }
   0xb   :  { %2810 = vmatpush3.bf16.msra.mxu0 %v2809_v25  ;;  %v2845_v42 = vpack.c.bf16 %v198_v37, %v197_v36  ;;  %v216_v43 = vld [vmem:[%s5194_s3 + $0x1b8] sm:$0xff]  ;;  %v167_v44 = vld [vmem:[%s5194_s3 + $0x30] sm:$0xff]  ;;  %v185_v50 = vld [vmem:[%s5194_s3 + $0xc0] sm:$0xff] }
   0xc   :  { %2842 = vmatpush3.bf16.msra.mxu1 %v2841_v29  ;;  %v168_v45 = vld [vmem:[%s5194_s3 + $0x38] sm:$0xff]  ;;  %2812 = vmatprep.subr.bf16.mxu0 %v2811_v30  ;;  %v2847_v47 = vpack.c.bf16 %v216_v43, %v215_v40  ;;  %v199_v48 = vld [vmem:[%s5194_s3 + $0x130] sm:$0xff]  ;;  %v186_v51 = vld [vmem:[%s5194_s3 + $0xc8] sm:$0xff]  ;;  %v3289_v40 = vmov 0.0|0.0   ;;  %v32_v43 = vlaneseq }
   0xd   :  { %2844 = vmatprep.subr.bf16.mxu1 %v2843_v34  ;;  %v200_v49 = vld [vmem:[%s5194_s3 + $0x138] sm:$0xff]  ;;  %v217_v52 = vld [vmem:[%s5194_s3 + $0x1c0] sm:$0xff]  ;;  %v218_v53 = vld [vmem:[%s5194_s3 + $0x1c8] sm:$0xff]  ;;  %v2817_v54 = vpack.c.bf16 %v168_v45, %v167_v44  ;;  %v2819_v58 = vpack.c.bf16 %v186_v51, %v185_v50 }
   0xe   :  { %v2849_v55 = vpack.c.bf16 %v200_v49, %v199_v48  ;;  %v169_v56 = vld [vmem:[%s5194_s3 + $0x40] sm:$0xff]  ;;  %v170_v57 = vld [vmem:[%s5194_s3 + $0x48] sm:$0xff]  ;;  %v2851_v59 = vpack.c.bf16 %v218_v53, %v217_v52  ;;  %v187_v62 = vld [vmem:[%s5194_s3 + $0xd0] sm:$0xff]  ;;  %v3561_v44 = vand.u32 127, %v32_v43 }
   0xf   :  { %2814 = vmatpush3.bf16.msra.mxu0 %v2813_v41  ;;  %v201_v60 = vld [vmem:[%s5194_s3 + $0x140] sm:$0xff]  ;;  %v202_v61 = vld [vmem:[%s5194_s3 + $0x148] sm:$0xff]  ;;  %v188_v63 = vld [vmem:[%s5194_s3 + $0xd8] sm:$0xff]  ;;  %v2821_v2 = vpack.c.bf16 %v170_v57, %v169_v56 }
  0x10   :  { %2846 = vmatpush3.bf16.msra.mxu1 %v2845_v42  ;;  %2816 = vmatprep.subr.bf16.mxu0 %v2815_v46  ;;  %v219_v0 = vld [vmem:[%s5194_s3 + $0x1d0] sm:$0xff]  ;;  %v220_v1 = vld [vmem:[%s5194_s3 + $0x1d8] sm:$0xff]  ;;  %v2853_v3 = vpack.c.bf16 %v202_v61, %v201_v60  ;;  %v2823_v6 = vpack.c.bf16 %v188_v63, %v187_v62  ;;  %v189_v10 = vld [vmem:[%s5194_s3 + $0xe0] sm:$0xff]  ;;  %v3573_v48 = vadd.s32 128, %v3561_v44  ;;  %v3576_v49 = vadd.s32 384, %v3561_v44 }
  0x11   :  { %2848 = vmatprep.subr.bf16.mxu1 %v2847_v47  ;;  %v171_v4 = vld [vmem:[%s5194_s3 + $0x50] sm:$0xff]  ;;  %v172_v5 = vld [vmem:[%s5194_s3 + $0x58] sm:$0xff]  ;;  %v2855_v7 = vpack.c.bf16 %v220_v1, %v219_v0  ;;  %v190_v11 = vld [vmem:[%s5194_s3 + $0xe8] sm:$0xff]  ;;  %v3579_v50 = vadd.s32 256, %v3561_v44  ;;  %v3290_v63 = vmov 1.0  }
  0x12   :  { %v203_v8 = vld [vmem:[%s5194_s3 + $0x150] sm:$0xff]  ;;  %v204_v9 = vld [vmem:[%s5194_s3 + $0x158] sm:$0xff]  ;;  %v221_v12 = vld [vmem:[%s5194_s3 + $0x1e0] sm:$0xff]  ;;  %v2825_v14 = vpack.c.bf16 %v172_v5, %v171_v4  ;;  %v2827_v19 = vpack.c.bf16 %v190_v11, %v189_v10  ;;  %v3640_v5 = vadd.s32 640, %v3561_v44 }
  0x13   :  { %2818 = vmatpush3.bf16.msra.mxu0 %v2817_v54  ;;  %v222_v13 = vld [vmem:[%s5194_s3 + $0x1e8] sm:$0xff]  ;;  %v2857_v15 = vpack.c.bf16 %v204_v9, %v203_v8  ;;  %v173_v16 = vld [vmem:[%s5194_s3 + $0x60] sm:$0xff]  ;;  %v191_v23 = vld [vmem:[%s5194_s3 + $0xf0] sm:$0xff] }
  0x14   :  { %2850 = vmatpush3.bf16.msra.mxu1 %v2849_v55  ;;  %2820 = vmatprep.subr.bf16.mxu0 %v2819_v58  ;;  %v174_v17 = vld [vmem:[%s5194_s3 + $0x68] sm:$0xff]  ;;  %v97_v18 = vld [vmem:[%s5195_s1] sm:$0xff]  ;;  %v2859_v20 = vpack.c.bf16 %v222_v13, %v221_v12  ;;  %v192_v24 = vld [vmem:[%s5194_s3 + $0xf8] sm:$0xff]  ;;  %v3291_v13 = vmov 0.0  }
  0x15   :  { %2852 = vmatprep.subr.bf16.mxu1 %v2851_v59  ;;  %v205_v21 = vld [vmem:[%s5194_s3 + $0x160] sm:$0xff]  ;;  %v206_v22 = vld [vmem:[%s5194_s3 + $0x168] sm:$0xff]  ;;  %v223_v25 = vld [vmem:[%s5194_s3 + $0x1f0] sm:$0xff]  ;;  %100 = vperm.xlu1 %3287, %v97_v18   ;;  %v2829_v27 = vpack.c.bf16 %v174_v17, %v173_v16  ;;  %v2831_v30 = vpack.c.bf16 %v192_v24, %v191_v23  ;;  %v3596_v59 = vadd.s32 896, %v3561_v44 }
  0x16   :  { %v224_v26 = vld [vmem:[%s5194_s3 + $0x1f8] sm:$0xff]  ;;  %v2861_v28 = vpack.c.bf16 %v206_v22, %v205_v21  ;;  %v175_v29 = vld [vmem:[%s5194_s3 + $0x70] sm:$0xff]  ;;  %v241_v35 = vld [vmem:[%s5194_s3 + $0x280] sm:$0xff] }
  0x17   :  { %2822 = vmatpush3.bf16.msra.mxu0 %v2821_v2  ;;  %v2863_v31 = vpack.c.bf16 %v224_v26, %v223_v25  ;;  %v176_v32 = vld [vmem:[%s5194_s3 + $0x78] sm:$0xff]  ;;  %v207_v33 = vld [vmem:[%s5194_s3 + $0x170] sm:$0xff]  ;;  %v242_v36 = vld [vmem:[%s5194_s3 + $0x288] sm:$0xff] }
  0x18   :  { %2854 = vmatpush3.bf16.msra.mxu1 %v2853_v3  ;;  %2824 = vmatprep.subr.bf16.mxu0 %v2823_v6  ;;  %v208_v34 = vld [vmem:[%s5194_s3 + $0x178] sm:$0xff]  ;;  %v2833_v37 = vpack.c.bf16 %v176_v32, %v175_v29  ;;  %v2867_v39 = vpack.c.bf16 %v242_v36, %v241_v35  ;;  %v129_v41 = vld [vmem:[%s5196_s2] sm:$0xff]  ;;  %v130_v42 = vld [vmem:[%s5196_s2 + $0x8] sm:$0x3] }
  0x19   :  { %2856 = vmatprep.subr.bf16.mxu1 %v2855_v7  ;;  %v2865_v38 = vpack.c.bf16 %v208_v34, %v207_v33  ;;  %132 = vperm.xlu1 %3287, %v129_v41   ;;  %v225_v45 = vld [vmem:[%s5194_s3 + $0x200] sm:$0xff]  ;;  %v226_v46 = vld [vmem:[%s5194_s3 + $0x208] sm:$0xff]  ;;  %v243_v52 = vld [vmem:[%s5194_s3 + $0x290] sm:$0xff] }
  0x1a   :  { %v257_v47 = vld [vmem:[%s5194_s3 + $0x300] sm:$0xff]  ;;  %v258_v51 = vld [vmem:[%s5194_s3 + $0x308] sm:$0xff]  ;;  %v244_v53 = vld [vmem:[%s5194_s3 + $0x298] sm:$0xff]  ;;  %v2869_v55 = vpack.c.bf16 %v226_v46, %v225_v45 }
  0x1b   :  { %2826 = vmatpush3.bf16.msra.mxu0 %v2825_v14  ;;  %v2900_v56 = vpack.c.bf16 %v258_v51, %v257_v47  ;;  %v2871_v57 = vpack.c.bf16 %v244_v53, %v243_v52  ;;  %v227_v58 = vld [vmem:[%s5194_s3 + $0x210] sm:$0xff]  ;;  %v228_v60 = vld [vmem:[%s5194_s3 + $0x218] sm:$0xff]  ;;  %v245_v0 = vld [vmem:[%s5194_s3 + $0x2a0] sm:$0xff] }
  0x1c   :  { %2858 = vmatpush3.bf16.msra.mxu1 %v2857_v15  ;;  %2828 = vmatprep.subr.bf16.mxu0 %v2827_v19  ;;  %v259_v61 = vld [vmem:[%s5194_s3 + $0x310] sm:$0xff]  ;;  %v260_v62 = vld [vmem:[%s5194_s3 + $0x318] sm:$0xff]  ;;  %v246_v1 = vld [vmem:[%s5194_s3 + $0x2a8] sm:$0xff]  ;;  %v2873_v3 = vpack.c.bf16 %v228_v60, %v227_v58 }
  0x1d   :  { %2860 = vmatprep.subr.bf16.mxu1 %v2859_v20  ;;  %135 = vperm.xlu1 %3287, %v130_v42   ;;  %v2903_v4 = vpack.c.bf16 %v260_v62, %v259_v61  ;;  %v229_v6 = vld [vmem:[%s5194_s3 + $0x220] sm:$0xff]  ;;  %v230_v7 = vld [vmem:[%s5194_s3 + $0x228] sm:$0xff]  ;;  %v2875_v10 = vpack.c.bf16 %v246_v1, %v245_v0  ;;  %v247_v11 = vld [vmem:[%s5194_s3 + $0x2b0] sm:$0xff] }
  0x1e   :  { %v261_v8 = vld [vmem:[%s5194_s3 + $0x320] sm:$0xff]  ;;  %v262_v9 = vld [vmem:[%s5194_s3 + $0x328] sm:$0xff]  ;;  %v248_v12 = vld [vmem:[%s5194_s3 + $0x2b8] sm:$0xff]  ;;  %v2877_v15 = vpack.c.bf16 %v230_v7, %v229_v6 }
  0x1f   :  { %2830 = vmatpush3.bf16.msra.mxu0 %v2829_v27  ;;  %v2906_v16 = vpack.c.bf16 %v262_v9, %v261_v8  ;;  %v231_v17 = vld [vmem:[%s5194_s3 + $0x230] sm:$0xff]  ;;  %v2879_v18 = vpack.c.bf16 %v248_v12, %v247_v11  ;;  %v232_v19 = vld [vmem:[%s5194_s3 + $0x238] sm:$0xff]  ;;  %v249_v22 = vld [vmem:[%s5194_s3 + $0x2c0] sm:$0xff]  ;;  %v3804_v12 = vadd.s32 512, %v3561_v44 }
  0x20   :  { %2862 = vmatpush3.bf16.msra.mxu1 %v2861_v28  ;;  %2832 = vmatprep.subr.bf16.mxu0 %v2831_v30  ;;  %v263_v20 = vld [vmem:[%s5194_s3 + $0x330] sm:$0xff]  ;;  %v264_v21 = vld [vmem:[%s5194_s3 + $0x338] sm:$0xff]  ;;  %v250_v23 = vld [vmem:[%s5194_s3 + $0x2c8] sm:$0xff]  ;;  %v2881_v24 = vpack.c.bf16 %v232_v19, %v231_v17 }
  0x21   :  { %2864 = vmatprep.subr.bf16.mxu1 %v2863_v31  ;;  %v2909_v25 = vpack.c.bf16 %v264_v21, %v263_v20  ;;  %v233_v26 = vld [vmem:[%s5194_s3 + $0x240] sm:$0xff]  ;;  %v2883_v27 = vpack.c.bf16 %v250_v23, %v249_v22  ;;  %v234_v28 = vld [vmem:[%s5194_s3 + $0x248] sm:$0xff]  ;;  %v251_v31 = vld [vmem:[%s5194_s3 + $0x2d0] sm:$0xff] }
  0x22   :  { %v265_v29 = vld [vmem:[%s5194_s3 + $0x340] sm:$0xff]  ;;  %v266_v30 = vld [vmem:[%s5194_s3 + $0x348] sm:$0xff]  ;;  %v252_v32 = vld [vmem:[%s5194_s3 + $0x2d8] sm:$0xff]  ;;  %v2885_v33 = vpack.c.bf16 %v234_v28, %v233_v26 }
  0x23   :  { %2834 = vmatpush3.bf16.msra.mxu0 %v2833_v37  ;;  %v2912_v34 = vpack.c.bf16 %v266_v30, %v265_v29  ;;  %v235_v35 = vld [vmem:[%s5194_s3 + $0x250] sm:$0xff]  ;;  %v2887_v36 = vpack.c.bf16 %v252_v32, %v251_v31  ;;  %v236_v37 = vld [vmem:[%s5194_s3 + $0x258] sm:$0xff]  ;;  %v253_v41 = vld [vmem:[%s5194_s3 + $0x2e0] sm:$0xff] }
  0x24   :  { %2866 = vmatpush3.bf16.msra.mxu1 %v2865_v38  ;;  %2868 = vmatprep.subr.bf16.mxu0 %v2867_v39  ;;  %v267_v38 = vld [vmem:[%s5194_s3 + $0x350] sm:$0xff]  ;;  %v268_v39 = vld [vmem:[%s5194_s3 + $0x358] sm:$0xff]  ;;  %v254_v42 = vld [vmem:[%s5194_s3 + $0x2e8] sm:$0xff]  ;;  %v2889_v45 = vpack.c.bf16 %v236_v37, %v235_v35 }
  0x25   :  { %2899 = vmatprep.subr.bf16.mxu1 %v3289_v40  ;;  %v2915_v46 = vpack.c.bf16 %v268_v39, %v267_v38  ;;  %v237_v47 = vld [vmem:[%s5194_s3 + $0x260] sm:$0xff]  ;;  %v2891_v51 = vpack.c.bf16 %v254_v42, %v253_v41  ;;  %v238_v52 = vld [vmem:[%s5194_s3 + $0x268] sm:$0xff]  ;;  %v239_v61 = vld [vmem:[%s5194_s3 + $0x270] sm:$0xff] }
  0x26   :  { %v269_v53 = vld [vmem:[%s5194_s3 + $0x360] sm:$0xff]  ;;  %v2893_v58 = vpack.c.bf16 %v238_v52, %v237_v47  ;;  %v240_v0 = vld [vmem:[%s5194_s3 + $0x278] sm:$0xff]  ;;  %v271_v1 = vld [vmem:[%s5194_s3 + $0x370] sm:$0xff] }
  0x27   :  { %v610_v6 = vld [vmem:[%s5197_s5 + $0x88] sm:$0xff]  ;;  %v2897_v7 = vpack.c.bf16 %v240_v0, %v239_v61  ;;  %v611_v17 = vld [vmem:[%s5197_s5 + $0x90] sm:$0xff]  ;;  %v276_v22 = vld [vmem:[%s5194_s3 + $0x398] sm:$0xff] }
  0x28   :  { %v274_v11 = vld [vmem:[%s5194_s3 + $0x388] sm:$0xff]  ;;  %v275_v21 = vld [vmem:[%s5194_s3 + $0x390] sm:$0xff]  ;;  %v613_v26 = vld [vmem:[%s5197_s5 + $0xa0] sm:$0xff] }
  0x29   :  { %v2927_v28 = vpack.c.bf16 %v276_v22, %v275_v21  ;;  %v277_v30 = vld [vmem:[%s5194_s3 + $0x3a0] sm:$0xff]  ;;  %v278_v31 = vld [vmem:[%s5194_s3 + $0x3a8] sm:$0xff]  ;;  %v615_v35 = vld [vmem:[%s5197_s5 + $0xb0] sm:$0xff]  ;;  %v3952_v22 = vadd.s32 768, %v3561_v44 }
  0x2a   :  { %v2930_v37 = vpack.c.bf16 %v278_v31, %v277_v30  ;;  %v279_v39 = vld [vmem:[%s5194_s3 + $0x3b0] sm:$0xff]  ;;  %v280_v41 = vld [vmem:[%s5194_s3 + $0x3b8] sm:$0xff]  ;;  %v617_v47 = vld [vmem:[%s5197_s5 + $0xc0] sm:$0xff] }
  0x2b   :  { %v2933_v52 = vpack.c.bf16 %v280_v41, %v279_v39  ;;  %v619_v61 = vld [vmem:[%s5197_s5 + $0xd0] sm:$0xff]  ;;  %v625_v21 = vld [vmem:[%s5197_s5 + $0x100] sm:$0xff] }
  0x2c   :  { %v607_v31 = vld [vmem:[%s5197_s5 + $0x70] sm:$0xff] }
  0x81   :  { %v3590_v54 = vpop.permute.xlu0 %44 }
  0x82   :  { %vm50_vm0 = vcmp.eq.s32.totalorder %v3573_v48, %v3590_v54  ;;  %vm52_vm1 = vcmp.eq.s32.totalorder %v3576_v49, %v3590_v54  ;;  %vm49_vm2 = vcmp.eq.s32.totalorder %v3561_v44, %v3590_v54  ;;  %vm51_vm3 = vcmp.eq.s32.totalorder %v3579_v50, %v3590_v54 }
  0x83   :  { %2417 = vmatprep.mubr.msk.f32.mxu0 %vm50_vm0, %v3290_v63  ;;  %2421 = vmatprep.mubr.msk.f32.mxu1 %vm52_vm1, %v3290_v63  ;;  %vm56_vm4 = vcmp.eq.s32.totalorder %v3596_v59, %v3590_v54  ;;  %vm54_vm10 = vcmp.eq.s32.totalorder %v3640_v5, %v3590_v54  ;;  %vm53_vm11 = vcmp.eq.s32.totalorder %v3804_v12, %v3590_v54 }
  0x84   :  { %2418 = vmatmul.mubr.msk.f32.vlgmr.msra.gmra.mrb[0].mxu0 %vm49_vm2, %v3290_v63  ;;  %2422 = vmatmul.mubr.msk.f32.vlgmr.msra.gmra.mrb[0].mxu1 %vm51_vm3, %v3290_v63  ;;  %v3693_v14 = vsel %vm56_vm4, 1.0, %v3291_v13  ;;  %vm55_vm15 = vcmp.eq.s32.totalorder %v3952_v22, %v3590_v54  ;;  %v1065_v54 = vld [vmem:[%s5198_s4 + $0x178] sm:$0xff] }
  0x85   :  { %2870 = vmatpush3.bf16.msra.mxu0 %v2869_v55  ;;  %2901 = vmatpush1.bf16.msra.mxu1 %v2900_v56  ;;  %v3637_v2 = vpop.permute.xlu0 %47  ;;  %v270_v55 = vld [vmem:[%s5194_s3 + $0x368] sm:$0xff]  ;;  %v255_v56 = vld [vmem:[%s5194_s3 + $0x2f0] sm:$0xff] }
  0x86   :  { %vm58_vm5 = vcmp.eq.s32.totalorder %v3573_v48, %v3637_v2  ;;  %vm60_vm6 = vcmp.eq.s32.totalorder %v3576_v49, %v3637_v2  ;;  %2872 = vmatprep.subr.bf16.mxu0 %v2871_v57  ;;  %2902 = vmatprep.subr.bf16.mxu1 %v3289_v40  ;;  %vm57_vm7 = vcmp.eq.s32.totalorder %v3561_v44, %v3637_v2  ;;  %v256_v57 = vld [vmem:[%s5194_s3 + $0x2f8] sm:$0xff] }
  0x87   :  { %2419 = vmatprep.mubr.msk.f32.mxu0 %vm58_vm5, %v3290_v63  ;;  %2423 = vmatprep.mubr.msk.f32.mxu1 %vm60_vm6, %v3290_v63  ;;  %vm59_vm8 = vcmp.eq.s32.totalorder %v3579_v50, %v3637_v2  ;;  %v2918_v60 = vpack.c.bf16 %v270_v55, %v269_v53  ;;  %v2895_v62 = vpack.c.bf16 %v256_v57, %v255_v56  ;;  %v281_v55 = vld [vmem:[%s5194_s3 + $0x3c0] sm:$0xff]  ;;  %v282_v56 = vld [vmem:[%s5194_s3 + $0x3c8] sm:$0xff] }
  0x88   :  { %2420 = vmatmul.mubr.msk.f32.gmra.mrb[2].mxu0 %vm57_vm7, %v3290_v63  ;;  %2424 = vmatmul.mubr.msk.f32.gmra.mrb[2].mxu1 %vm59_vm8, %v3290_v63  ;;  %vm62_vm12 = vcmp.eq.s32.totalorder %v3640_v5, %v3637_v2  ;;  %vm61_vm13 = vcmp.eq.s32.totalorder %v3804_v12, %v3637_v2  ;;  %v2936_v0 = vpack.c.bf16 %v282_v56, %v281_v55  ;;  %v676_v55 = vld [vmem:[%s5197_s5 + $0x298] sm:$0xff] }
  0x89   :  { %2874 = vmatpush3.bf16.msra.mxu0 %v2873_v3  ;;  %2904 = vmatpush1.bf16.msra.mxu1 %v2903_v4  ;;  %v272_v3 = vld [vmem:[%s5194_s3 + $0x378] sm:$0xff]  ;;  %v609_v4 = vld [vmem:[%s5197_s5 + $0x80] sm:$0xff]  ;;  %vm64_vm14 = vcmp.eq.s32.totalorder %v3596_v59, %v3637_v2 }
  0x8a   :  { %2425 = vmatprep.mubr.msk.f32.mxu0 %vm54_vm10, %v3290_v63  ;;  %2429 = vmatprep.mubr.msk.f32.mxu1 %vm286_vm9, %v3693_v14  ;;  %v2921_v8 = vpack.c.bf16 %v272_v3, %v271_v1  ;;  %v2941_v9 = vpack.c.bf16 %v610_v6, %v609_v4  ;;  %v283_v3 = vld [vmem:[%s5194_s3 + $0x3d0] sm:$0xff]  ;;  %v284_v4 = vld [vmem:[%s5194_s3 + $0x3d8] sm:$0xff]  ;;  %v4000_v39 = vsel %vm64_vm14, 1.0, %v3291_v13 }
  0x8b   :  { %2876 = vmatprep.subr.bf16.mxu0 %v2875_v10  ;;  %2905 = vmatprep.subr.bf16.mxu1 %v3289_v40  ;;  %v273_v10 = vld [vmem:[%s5194_s3 + $0x380] sm:$0xff] }
  0x8c   :  { %v2924_v19 = vpack.c.bf16 %v274_v11, %v273_v10  ;;  %v622_v10 = vld [vmem:[%s5197_s5 + $0xe8] sm:$0xff]  ;;  %v2939_v11 = vpack.c.bf16 %v284_v4, %v283_v3  ;;  %v660_v3 = vld [vmem:[%s5197_s5 + $0x218] sm:$0xff] }
  0x8d   :  { %2878 = vmatpush3.bf16.msra.mxu0 %v2877_v15  ;;  %2907 = vmatpush1.bf16.msra.mxu1 %v2906_v16  ;;  %v593_v15 = vld [vmem:[%s5197_s5] sm:$0xff]  ;;  %v594_v16 = vld [vmem:[%s5197_s5 + $0x8] sm:$0xff] }
  0x8e   :  { %2880 = vmatprep.subr.bf16.mxu0 %v2879_v18  ;;  %2908 = vmatprep.subr.bf16.mxu1 %v3289_v40  ;;  %v612_v18 = vld [vmem:[%s5197_s5 + $0x98] sm:$0xff]  ;;  %v2943_v20 = vpack.c.bf16 %v594_v16, %v593_v15 }
  0x8f   :  { %v2945_v23 = vpack.c.bf16 %v612_v18, %v611_v17  ;;  %v605_v17 = vld [vmem:[%s5197_s5 + $0x60] sm:$0xff]  ;;  %v606_v18 = vld [vmem:[%s5197_s5 + $0x68] sm:$0xff] }
  0x91   :  { %2882 = vmatpush3.bf16.msra.mxu0 %v2881_v24  ;;  %2910 = vmatpush1.bf16.msra.mxu1 %v2909_v25  ;;  %v595_v24 = vld [vmem:[%s5197_s5 + $0x10] sm:$0xff]  ;;  %v596_v25 = vld [vmem:[%s5197_s5 + $0x18] sm:$0xff] }
  0x92   :  { %2884 = vmatprep.subr.bf16.mxu0 %v2883_v27  ;;  %2911 = vmatprep.subr.bf16.mxu1 %v3289_v40  ;;  %v614_v27 = vld [vmem:[%s5197_s5 + $0xa8] sm:$0xff]  ;;  %v2947_v29 = vpack.c.bf16 %v596_v25, %v595_v24  ;;  %v623_v24 = vld [vmem:[%s5197_s5 + $0xf0] sm:$0xff]  ;;  %v624_v25 = vld [vmem:[%s5197_s5 + $0xf8] sm:$0xff] }
  0x93   :  { %v2949_v32 = vpack.c.bf16 %v614_v27, %v613_v26  ;;  %v285_v26 = vld [vmem:[%s5194_s3 + $0x3e0] sm:$0xff]  ;;  %v2967_v27 = vpack.c.bf16 %v606_v18, %v605_v17 }
  0x94   :  { %v661_v18 = vld [vmem:[%s5197_s5 + $0x220] sm:$0xff] }
  0x95   :  { %2886 = vmatpush3.bf16.msra.mxu0 %v2885_v33  ;;  %2913 = vmatpush1.bf16.msra.mxu1 %v2912_v34  ;;  %v597_v33 = vld [vmem:[%s5197_s5 + $0x20] sm:$0xff]  ;;  %v598_v34 = vld [vmem:[%s5197_s5 + $0x28] sm:$0xff] }
  0x96   :  { %2888 = vmatprep.subr.bf16.mxu0 %v2887_v36  ;;  %2914 = vmatprep.subr.bf16.mxu1 %v3289_v40  ;;  %v616_v36 = vld [vmem:[%s5197_s5 + $0xb8] sm:$0xff]  ;;  %v2951_v38 = vpack.c.bf16 %v598_v34, %v597_v33  ;;  %v2969_v34 = vpack.c.bf16 %v624_v25, %v623_v24  ;;  %v633_v25 = vld [vmem:[%s5197_s5 + $0x140] sm:$0xff] }
  0x97   :  { %v2953_v42 = vpack.c.bf16 %v616_v36, %v615_v35  ;;  %v673_v35 = vld [vmem:[%s5197_s5 + $0x280] sm:$0xff]  ;;  %v674_v36 = vld [vmem:[%s5197_s5 + $0x288] sm:$0xff] }
  0x99   :  { %2890 = vmatpush3.bf16.msra.mxu0 %v2889_v45  ;;  %2916 = vmatpush1.bf16.msra.mxu1 %v2915_v46  ;;  %v599_v45 = vld [vmem:[%s5197_s5 + $0x30] sm:$0xff]  ;;  %v600_v46 = vld [vmem:[%s5197_s5 + $0x38] sm:$0xff] }
  0x9a   :  { %2892 = vmatprep.subr.bf16.mxu0 %v2891_v51  ;;  %2917 = vmatprep.subr.bf16.mxu1 %v3289_v40  ;;  %v618_v51 = vld [vmem:[%s5197_s5 + $0xc8] sm:$0xff]  ;;  %v2955_v53 = vpack.c.bf16 %v600_v46, %v599_v45  ;;  %v3005_v46 = vpack.c.bf16 %v674_v36, %v673_v35 }
  0x9b   :  { %v2957_v57 = vpack.c.bf16 %v618_v51, %v617_v47  ;;  %v646_v45 = vld [vmem:[%s5197_s5 + $0x1a8] sm:$0xff]  ;;  %v657_v47 = vld [vmem:[%s5197_s5 + $0x200] sm:$0xff] }
  0x9c   :  { %v658_v51 = vld [vmem:[%s5197_s5 + $0x208] sm:$0xff] }
  0x9d   :  { %2894 = vmatpush3.bf16.msra.mxu0 %v2893_v58  ;;  %2919 = vmatpush1.bf16.msra.mxu1 %v2918_v60  ;;  %v601_v58 = vld [vmem:[%s5197_s5 + $0x40] sm:$0xff]  ;;  %v602_v60 = vld [vmem:[%s5197_s5 + $0x48] sm:$0xff] }
  0x9e   :  { %2896 = vmatprep.subr.bf16.mxu0 %v2895_v62  ;;  %2920 = vmatprep.subr.bf16.mxu1 %v3289_v40  ;;  %v620_v62 = vld [vmem:[%s5197_s5 + $0xd8] sm:$0xff]  ;;  %v2959_v1 = vpack.c.bf16 %v602_v60, %v601_v58  ;;  %v630_v58 = vld [vmem:[%s5197_s5 + $0x128] sm:$0xff]  ;;  %v3007_v60 = vpack.c.bf16 %v658_v51, %v657_v47 }
  0x9f   :  { %v2961_v6 = vpack.c.bf16 %v620_v62, %v619_v61  ;;  %v647_v61 = vld [vmem:[%s5197_s5 + $0x1b0] sm:$0xff]  ;;  %v648_v62 = vld [vmem:[%s5197_s5 + $0x1b8] sm:$0xff]  ;;  %v682_v35 = vld [vmem:[%s5197_s5 + $0x2c8] sm:$0xff] }
  0xa0   :  { %v666_v47 = vld [vmem:[%s5197_s5 + $0x248] sm:$0xff] }
  0xa1   :  { %2898 = vmatpush3.bf16.msra.mxu0 %v2897_v7  ;;  %2922 = vmatpush1.bf16.msra.mxu1 %v2921_v8  ;;  %v603_v7 = vld [vmem:[%s5197_s5 + $0x50] sm:$0xff]  ;;  %v604_v8 = vld [vmem:[%s5197_s5 + $0x58] sm:$0xff] }
  0xa2   :  { %2923 = vmatprep.subr.bf16.mxu1 %v3289_v40  ;;  %2942 = vmatprep.subr.bf16.mxu0 %v2941_v9  ;;  %v621_v9 = vld [vmem:[%s5197_s5 + $0xe0] sm:$0xff]  ;;  %v2963_v15 = vpack.c.bf16 %v604_v8, %v603_v7  ;;  %v678_v7 = vld [vmem:[%s5197_s5 + $0x2a8] sm:$0xff]  ;;  %v2985_v8 = vpack.c.bf16 %v648_v62, %v647_v61  ;;  %v656_v61 = vld [vmem:[%s5197_s5 + $0x1f8] sm:$0xff] }
  0xa3   :  { %v2965_v16 = vpack.c.bf16 %v622_v10, %v621_v9  ;;  %v631_v9 = vld [vmem:[%s5197_s5 + $0x130] sm:$0xff]  ;;  %v632_v10 = vld [vmem:[%s5197_s5 + $0x138] sm:$0xff] }
  0xa4   :  { %2426 = vmatmul.mubr.msk.f32.vlgmr.msra.gmra.mrb[4].mxu0 %vm53_vm11, %v3290_v63 }
  0xa5   :  { %2427 = vmatprep.mubr.msk.f32.mxu0 %vm62_vm12, %v3290_v63  ;;  %2925 = vmatpush1.bf16.msra.mxu1 %v2924_v19  ;;  %v641_v19 = vld [vmem:[%s5197_s5 + $0x180] sm:$0xff] }
  0xa6   :  { %2944 = vmatpush3.bf16.msra.mxu0 %v2943_v20  ;;  %2926 = vmatprep.subr.bf16.mxu1 %v3289_v40  ;;  %v642_v20 = vld [vmem:[%s5197_s5 + $0x188] sm:$0xff] }
  0xa7   :  { %2946 = vmatprep.subr.bf16.mxu0 %v2945_v23  ;;  %v626_v23 = vld [vmem:[%s5197_s5 + $0x108] sm:$0xff]  ;;  %v2973_v30 = vpack.c.bf16 %v642_v20, %v641_v19  ;;  %v2987_v20 = vpack.c.bf16 %v632_v10, %v631_v9  ;;  %v640_v9 = vld [vmem:[%s5197_s5 + $0x178] sm:$0xff] }
  0xa8   :  { %2428 = vmatmul.mubr.msk.f32.gmra.mrb[6].mxu0 %vm61_vm13, %v3290_v63  ;;  %v2975_v33 = vpack.c.bf16 %v626_v23, %v625_v21  ;;  %v662_v19 = vld [vmem:[%s5197_s5 + $0x228] sm:$0xff]  ;;  %v679_v21 = vld [vmem:[%s5197_s5 + $0x2b0] sm:$0xff]  ;;  %v680_v23 = vld [vmem:[%s5197_s5 + $0x2b8] sm:$0xff] }
  0xa9   :  { %2928 = vmatpush1.bf16.msra.mxu1 %v2927_v28  ;;  %2433 = vmatprep.mubr.msk.f32.mxu0 %vm50_vm0, %v3290_v63  ;;  %v643_v28 = vld [vmem:[%s5197_s5 + $0x190] sm:$0xff]  ;;  %vm63_vm0 = vcmp.eq.s32.totalorder %v3952_v22, %v3637_v2 }
  0xaa   :  { %2948 = vmatpush3.bf16.msra.mxu0 %v2947_v29  ;;  %2929 = vmatprep.subr.bf16.mxu1 %v3289_v40  ;;  %v644_v29 = vld [vmem:[%s5197_s5 + $0x198] sm:$0xff]  ;;  %v1068_v22 = vld [vmem:[%s5198_s4 + $0x190] sm:$0xff] }
  0xab   :  { %2950 = vmatprep.subr.bf16.mxu0 %v2949_v32  ;;  %v608_v32 = vld [vmem:[%s5197_s5 + $0x78] sm:$0xff]  ;;  %v2977_v59 = vpack.c.bf16 %v644_v29, %v643_v28  ;;  %v651_v28 = vld [vmem:[%s5197_s5 + $0x1d0] sm:$0xff] }
  0xac   :  { %v2971_v41 = vpack.c.bf16 %v608_v32, %v607_v31  ;;  %v652_v29 = vld [vmem:[%s5197_s5 + $0x1d8] sm:$0xff]  ;;  %v663_v31 = vld [vmem:[%s5197_s5 + $0x230] sm:$0xff] }
  0xad   :  { %2931 = vmatpush1.bf16.msra.mxu1 %v2930_v37  ;;  %v627_v37 = vld [vmem:[%s5197_s5 + $0x110] sm:$0xff]  ;;  %v664_v32 = vld [vmem:[%s5197_s5 + $0x238] sm:$0xff]  ;;  %v2993_v36 = vpack.c.bf16 %v652_v29, %v651_v28  ;;  %v1034_v28 = vld [vmem:[%s5198_s4 + $0x80] sm:$0xff] }
  0xae   :  { %2952 = vmatpush3.bf16.msra.mxu0 %v2951_v38  ;;  %2932 = vmatprep.subr.bf16.mxu1 %v3289_v40  ;;  %v628_v38 = vld [vmem:[%s5197_s5 + $0x118] sm:$0xff]  ;;  %v1035_v29 = vld [vmem:[%s5198_s4 + $0x88] sm:$0xff] }
  0xaf   :  { %2954 = vmatprep.subr.bf16.mxu0 %v2953_v42  ;;  %v645_v42 = vld [vmem:[%s5197_s5 + $0x1a0] sm:$0xff] }
  0xb0   :  { %v2981_v56 = vpack.c.bf16 %v646_v45, %v645_v42  ;;  %v654_v42 = vld [vmem:[%s5197_s5 + $0x1e8] sm:$0xff] }
  0xb1   :  { %2934 = vmatpush1.bf16.msra.mxu1 %v2933_v52  ;;  %v2979_v52 = vpack.c.bf16 %v628_v38, %v627_v37  ;;  %v636_v37 = vld [vmem:[%s5197_s5 + $0x158] sm:$0xff]  ;;  %v3019_v38 = vpack.c.bf16 %v664_v32, %v663_v31 }
  0xb2   :  { %2956 = vmatpush3.bf16.msra.mxu0 %v2955_v53  ;;  %2935 = vmatprep.subr.bf16.mxu1 %v3289_v40  ;;  %v675_v53 = vld [vmem:[%s5197_s5 + $0x290] sm:$0xff]  ;;  %v692_v31 = vld [vmem:[%s5197_s5 + $0x318] sm:$0xff] }
  0xb3   :  { %2958 = vmatprep.subr.bf16.mxu0 %v2957_v57  ;;  %v629_v57 = vld [vmem:[%s5197_s5 + $0x120] sm:$0xff] }
  0xb4   :  { %v2983_v4 = vpack.c.bf16 %v630_v58, %v629_v57  ;;  %v638_v57 = vld [vmem:[%s5197_s5 + $0x168] sm:$0xff] }
  0xb5   :  { %2937 = vmatpush1.bf16.msra.mxu1 %v2936_v0  ;;  %v3009_v0 = vpack.c.bf16 %v676_v55, %v675_v53  ;;  %v684_v53 = vld [vmem:[%s5197_s5 + $0x2d8] sm:$0xff] }
  0xb6   :  { %2960 = vmatpush3.bf16.msra.mxu0 %v2959_v1  ;;  %2938 = vmatprep.subr.bf16.mxu1 %v3289_v40  ;;  %v659_v1 = vld [vmem:[%s5197_s5 + $0x210] sm:$0xff] }
  0xb7   :  { %2962 = vmatprep.subr.bf16.mxu0 %v2961_v6  ;;  %v677_v6 = vld [vmem:[%s5197_s5 + $0x2a0] sm:$0xff] }
  0xb8   :  { %v3013_v17 = vpack.c.bf16 %v678_v7, %v677_v6  ;;  %v686_v6 = vld [vmem:[%s5197_s5 + $0x2e8] sm:$0xff] }
  0xb9   :  { %2940 = vmatpush1.bf16.msra.mxu1 %v2939_v11  ;;  %v3011_v11 = vpack.c.bf16 %v660_v3, %v659_v1  ;;  %v668_v1 = vld [vmem:[%s5197_s5 + $0x258] sm:$0xff] }
  0xba   :  { %2964 = vmatpush3.bf16.msra.mxu0 %v2963_v15  ;;  %574 = vmatprep.subr.mxu1 %v3291_v13  ;;  %v649_v15 = vld [vmem:[%s5197_s5 + $0x1c0] sm:$0xff] }
  0xbb   :  { %2966 = vmatprep.subr.bf16.mxu0 %v2965_v16  ;;  %v650_v16 = vld [vmem:[%s5197_s5 + $0x1c8] sm:$0xff] }
  0xbc   :  { %v2989_v24 = vpack.c.bf16 %v650_v16, %v649_v15  ;;  %v669_v15 = vld [vmem:[%s5197_s5 + $0x260] sm:$0xff]  ;;  %v670_v16 = vld [vmem:[%s5197_s5 + $0x268] sm:$0xff] }
  0xbd   :  { %575 = vmatpush1.msra.mxu1 %v285_v26  ;;  %v634_v26 = vld [vmem:[%s5197_s5 + $0x148] sm:$0xff] }
  0xbe   :  { %2968 = vmatpush3.bf16.msra.mxu0 %v2967_v27  ;;  %2430 = vmatmul.mubr.msk.f32.vlgmr.msra.gmra.mrb[4].mxu1 %vm55_vm15, %v3290_v63  ;;  %v3015_v27 = vpack.c.bf16 %v662_v19, %v661_v18  ;;  %v687_v18 = vld [vmem:[%s5197_s5 + $0x2f0] sm:$0xff]  ;;  %v688_v19 = vld [vmem:[%s5197_s5 + $0x2f8] sm:$0xff] }
  0xbf   :  { %2974 = vmatprep.subr.bf16.mxu1 %v2973_v30  ;;  %2431 = vmatprep.mubr.msk.f32.mxu1 %vm286_vm9, %v4000_v39  ;;  %v3017_v30 = vpack.c.bf16 %v680_v23, %v679_v21  ;;  %v690_v21 = vld [vmem:[%s5197_s5 + $0x308] sm:$0xff]  ;;  %v3031_v23 = vpack.c.bf16 %v670_v16, %v669_v15  ;;  %v700_v15 = vld [vmem:[%s5197_s5 + $0x358] sm:$0xff] }
  0xc0   :  { %2976 = vmatpush3.bf16.msra.mxu1 %v2975_v33  ;;  %2970 = vmatprep.subr.bf16.mxu0 %v2969_v34  ;;  %v2991_v33 = vpack.c.bf16 %v634_v26, %v633_v25  ;;  %v681_v34 = vld [vmem:[%s5197_s5 + $0x2c0] sm:$0xff]  ;;  %v671_v25 = vld [vmem:[%s5197_s5 + $0x270] sm:$0xff]  ;;  %v672_v26 = vld [vmem:[%s5197_s5 + $0x278] sm:$0xff] }
  0xc1   :  { %2978 = vmatprep.subr.bf16.mxu1 %v2977_v59  ;;  %v635_v59 = vld [vmem:[%s5197_s5 + $0x150] sm:$0xff]  ;;  %v3021_v45 = vpack.c.bf16 %v682_v35, %v681_v34  ;;  %v3035_v32 = vpack.c.bf16 %v672_v26, %v671_v25  ;;  %v1018_v34 = vld [vmem:[%s5198_s4] sm:$0xff]  ;;  %v1019_v35 = vld [vmem:[%s5198_s4 + $0x8] sm:$0xff] }
  0xc2   :  { %2972 = vmatpush3.bf16.msra.mxu0 %v2971_v41  ;;  %2432 = vmatmul.mubr.msk.f32.gmra.mrb[6].mxu1 %vm63_vm0, %v3290_v63  ;;  %v653_v41 = vld [vmem:[%s5197_s5 + $0x1e0] sm:$0xff]  ;;  %v2995_v51 = vpack.c.bf16 %v636_v37, %v635_v59  ;;  %v1036_v59 = vld [vmem:[%s5198_s4 + $0x90] sm:$0xff]  ;;  %v1037_v37 = vld [vmem:[%s5198_s4 + $0x98] sm:$0xff] }
  0xc3   :  { %2437 = vmatprep.mubr.msk.f32.mxu1 %vm52_vm1, %v3290_v63  ;;  %3006 = vmatprep.subr.bf16.mxu0 %v3005_v46  ;;  %v665_v46 = vld [vmem:[%s5197_s5 + $0x240] sm:$0xff]  ;;  %v2997_v55 = vpack.c.bf16 %v654_v42, %v653_v41  ;;  %v694_v41 = vld [vmem:[%s5197_s5 + $0x328] sm:$0xff]  ;;  %v4240_v42 = vpack.c.bf16 %v1019_v35, %v1018_v34  ;;  %v703_v34 = vld [vmem:[%s5197_s5 + $0x370] sm:$0xff] }
  0xc4   :  { %2980 = vmatpush3.bf16.msra.mxu1 %v2979_v52  ;;  %v683_v52 = vld [vmem:[%s5197_s5 + $0x2d0] sm:$0xff]  ;;  %v3023_v58 = vpack.c.bf16 %v666_v47, %v665_v46  ;;  %v1021_v47 = vld [vmem:[%s5198_s4 + $0x18] sm:$0xff]  ;;  %v702_v25 = vld [vmem:[%s5197_s5 + $0x368] sm:$0xff] }
  0xc5   :  { %2434 = vmatmul.mubr.msk.f32.vlgmr.msra.gmra.mrb[8].mxu0 %vm49_vm2, %v3290_v63  ;;  %2982 = vmatprep.subr.bf16.mxu1 %v2981_v56  ;;  %v637_v56 = vld [vmem:[%s5197_s5 + $0x160] sm:$0xff]  ;;  %v3025_v62 = vpack.c.bf16 %v684_v53, %v683_v52  ;;  %v1020_v46 = vld [vmem:[%s5198_s4 + $0x10] sm:$0xff]  ;;  %v1039_v53 = vld [vmem:[%s5198_s4 + $0xa8] sm:$0xff] }
  0xc6   :  { %2435 = vmatprep.mubr.msk.f32.mxu0 %vm58_vm5, %v3290_v63  ;;  %3008 = vmatpush3.bf16.msra.mxu0 %v3007_v60  ;;  %v655_v60 = vld [vmem:[%s5197_s5 + $0x1f0] sm:$0xff]  ;;  %v2999_v3 = vpack.c.bf16 %v638_v57, %v637_v56  ;;  %v1038_v52 = vld [vmem:[%s5198_s4 + $0xa0] sm:$0xff]  ;;  %v696_v56 = vld [vmem:[%s5197_s5 + $0x338] sm:$0xff]  ;;  %v4281_v57 = vpack.c.bf16 %v1021_v47, %v1020_v46  ;;  %vm1081_vm5 = vcmask 949248  }
  0xc7   :  { %3010 = vmatprep.subr.bf16.mxu0 %v3009_v0  ;;  %v667_v0 = vld [vmem:[%s5197_s5 + $0x250] sm:$0xff]  ;;  %v3001_v7 = vpack.c.bf16 %v656_v61, %v655_v60  ;;  %v1022_v60 = vld [vmem:[%s5198_s4 + $0x20] sm:$0xff]  ;;  %v1023_v61 = vld [vmem:[%s5198_s4 + $0x28] sm:$0xff] }
  0xc8   :  { %2984 = vmatpush3.bf16.msra.mxu1 %v2983_v4  ;;  %v685_v4 = vld [vmem:[%s5197_s5 + $0x2e0] sm:$0xff]  ;;  %v3027_v10 = vpack.c.bf16 %v668_v1, %v667_v0  ;;  %v1041_v0 = vld [vmem:[%s5198_s4 + $0xb8] sm:$0xff]  ;;  %v1048_v46 = vld [vmem:[%s5198_s4 + $0xf0] sm:$0xff] }
  0xc9   :  { %2436 = vmatmul.mubr.msk.f32.gmra.mrb[10].mxu0 %vm57_vm7, %v3290_v63  ;;  %2986 = vmatprep.subr.bf16.mxu1 %v2985_v8  ;;  %v639_v8 = vld [vmem:[%s5197_s5 + $0x170] sm:$0xff]  ;;  %v697_v1 = vld [vmem:[%s5197_s5 + $0x340] sm:$0xff]  ;;  %v704_v35 = vld [vmem:[%s5197_s5 + $0x378] sm:$0xff] }
  0xca   :  { %3012 = vmatpush3.bf16.msra.mxu0 %v3011_v11  ;;  %2441 = vmatprep.mubr.msk.f32.mxu0 %vm54_vm10, %v3290_v63  ;;  %v3029_v11 = vpack.c.bf16 %v686_v6, %v685_v4  ;;  %v4312_v4 = vpack.c.bf16 %v1023_v61, %v1022_v60  ;;  %v1024_v6 = vld [vmem:[%s5198_s4 + $0x30] sm:$0xff]  ;;  %v1049_v47 = vld [vmem:[%s5198_s4 + $0xf8] sm:$0xff] }
  0xcb   :  { %3014 = vmatprep.subr.bf16.mxu0 %v3013_v17  ;;  %v3003_v17 = vpack.c.bf16 %v640_v9, %v639_v8  ;;  %v1042_v9 = vld [vmem:[%s5198_s4 + $0xc0] sm:$0xff]  ;;  %v1033_v60 = vld [vmem:[%s5198_s4 + $0x78] sm:$0xff] }
  0xcc   :  { %2988 = vmatpush3.bf16.msra.mxu1 %v2987_v20  ;;  %v689_v20 = vld [vmem:[%s5197_s5 + $0x300] sm:$0xff] }
  0xcd   :  { %2990 = vmatprep.subr.bf16.mxu1 %v2989_v24  ;;  %v3033_v24 = vpack.c.bf16 %v688_v19, %v687_v18  ;;  %v1026_v18 = vld [vmem:[%s5198_s4 + $0x40] sm:$0xff]  ;;  %v1027_v19 = vld [vmem:[%s5198_s4 + $0x48] sm:$0xff] }
  0xce   :  { %3016 = vmatpush3.bf16.msra.mxu0 %v3015_v27  ;;  %v3038_v27 = vpack.c.bf16 %v690_v21, %v689_v20  ;;  %v1044_v21 = vld [vmem:[%s5198_s4 + $0xd0] sm:$0xff]  ;;  %v4363_v26 = vpack.c.bf16 %v1027_v19, %v1026_v18 }
  0xcf   :  { %3018 = vmatprep.subr.bf16.mxu0 %v3017_v30  ;;  %v691_v30 = vld [vmem:[%s5197_s5 + $0x310] sm:$0xff] }
  0xd0   :  { %2992 = vmatpush3.bf16.msra.mxu1 %v2991_v33  ;;  %v4215_v33 = vpack.c.bf16 %v1035_v29, %v1034_v28  ;;  %v1028_v28 = vld [vmem:[%s5198_s4 + $0x50] sm:$0xff]  ;;  %v1029_v29 = vld [vmem:[%s5198_s4 + $0x58] sm:$0xff] }
  0xd1   :  { %2994 = vmatprep.subr.bf16.mxu1 %v2993_v36  ;;  %v3041_v36 = vpack.c.bf16 %v692_v31, %v691_v30  ;;  %v1046_v31 = vld [vmem:[%s5198_s4 + $0xe0] sm:$0xff]  ;;  %v711_v19 = vld [vmem:[%s5197_s5 + $0x3b0] sm:$0xff] }
  0xd2   :  { %3020 = vmatpush3.bf16.msra.mxu0 %v3019_v38  ;;  %v693_v38 = vld [vmem:[%s5197_s5 + $0x320] sm:$0xff] }
  0xd3   :  { %3022 = vmatprep.subr.bf16.mxu0 %v3021_v45  ;;  %v4247_v45 = vpack.c.bf16 %v1037_v37, %v1036_v59  ;;  %v1030_v37 = vld [vmem:[%s5198_s4 + $0x60] sm:$0xff] }
  0xd4   :  { %2996 = vmatpush3.bf16.msra.mxu1 %v2995_v51  ;;  %v3044_v51 = vpack.c.bf16 %v694_v41, %v693_v38  ;;  %v1031_v38 = vld [vmem:[%s5198_s4 + $0x68] sm:$0xff]  ;;  %v3059_v41 = vpack.c.bf16 %v704_v35, %v703_v34  ;;  %v1057_v34 = vld [vmem:[%s5198_s4 + $0x138] sm:$0xff] }
  0xd5   :  { %2998 = vmatprep.subr.bf16.mxu1 %v2997_v55  ;;  %v4263_v55 = vpop.permute.xlu1 %100 }
  0xd6   :  { %3024 = vmatpush3.bf16.msra.mxu0 %v3023_v58  ;;  %v4284_v58 = vpack.c.bf16 %v1039_v53, %v1038_v52  ;;  %vm106_vm1 = vcmp.eq.s32.totalorder %v3573_v48, %v4263_v55  ;;  %v706_v52 = vld [vmem:[%s5197_s5 + $0x388] sm:$0xff]  ;;  %v4413_v53 = vpack.c.bf16 %v1031_v38, %v1030_v37  ;;  %vm105_vm2 = vcmp.eq.s32.totalorder %v3561_v44, %v4263_v55  ;;  %v715_v37 = vld [vmem:[%s5197_s5 + $0x3d0] sm:$0xff]  ;;  %v716_v38 = vld [vmem:[%s5197_s5 + $0x3d8] sm:$0xff] }
  0xd7   :  { %3026 = vmatprep.subr.bf16.mxu0 %v3025_v62  ;;  %v1040_v62 = vld [vmem:[%s5198_s4 + $0xb0] sm:$0xff] }
  0xd8   :  { %3000 = vmatpush3.bf16.msra.mxu1 %v2999_v3  ;;  %v698_v3 = vld [vmem:[%s5197_s5 + $0x348] sm:$0xff]  ;;  %v4316_v12 = vpack.c.bf16 %v1041_v0, %v1040_v62  ;;  %v708_v62 = vld [vmem:[%s5197_s5 + $0x398] sm:$0xff] }
  0xd9   :  { %3002 = vmatprep.subr.bf16.mxu1 %v3001_v7  ;;  %v1025_v7 = vld [vmem:[%s5198_s4 + $0x38] sm:$0xff]  ;;  %v3050_v8 = vpack.c.bf16 %v698_v3, %v697_v1  ;;  %v1050_v1 = vld [vmem:[%s5198_s4 + $0x100] sm:$0xff]  ;;  %v1051_v3 = vld [vmem:[%s5198_s4 + $0x108] sm:$0xff] }
  0xda   :  { %3028 = vmatpush3.bf16.msra.mxu0 %v3027_v10  ;;  %v1043_v10 = vld [vmem:[%s5198_s4 + $0xc8] sm:$0xff]  ;;  %v4338_v16 = vpack.c.bf16 %v1025_v7, %v1024_v6  ;;  %v709_v7 = vld [vmem:[%s5197_s5 + $0x3a0] sm:$0xff] }
  0xdb   :  { %3030 = vmatprep.subr.bf16.mxu0 %v3029_v11  ;;  %v699_v11 = vld [vmem:[%s5197_s5 + $0x350] sm:$0xff] }
  0xdc   :  { %3004 = vmatpush3.bf16.msra.mxu1 %v3003_v17  ;;  %v4341_v17 = vpack.c.bf16 %v1043_v10, %v1042_v9  ;;  %v3053_v20 = vpack.c.bf16 %v700_v15, %v699_v11  ;;  %v4448_v9 = vpop.permute.xlu0 %103  ;;  %v4453_v10 = vpack.c.bf16 %v1051_v3, %v1050_v1  ;;  %v1052_v11 = vld [vmem:[%s5198_s4 + $0x110] sm:$0xff]  ;;  %v1053_v15 = vld [vmem:[%s5198_s4 + $0x118] sm:$0xff]  ;;  %v1063_v1 = vld [vmem:[%s5198_s4 + $0x168] sm:$0xff]  ;;  %v4549_v3 = vpop.permute.xlu1 %132 }
  0xdd   :  { %3037 = vmatprep.subr.bf16.mxu1 %v3289_v40  ;;  %vm110_vm4 = vcmp.eq.s32.totalorder %v3573_v48, %v4448_v9  ;;  %vm138_vm7 = vcmp.eq.s32.totalorder %v3573_v48, %v4549_v3  ;;  %vm140_vm10 = vcmp.eq.s32.totalorder %v3576_v49, %v4549_v3  ;;  %vm112_vm14 = vcmp.eq.s32.totalorder %v3576_v49, %v4448_v9 }
  0xde   :  { %3032 = vmatpush3.bf16.msra.mxu0 %v3031_v23  ;;  %v1045_v23 = vld [vmem:[%s5198_s4 + $0xd8] sm:$0xff] }
  0xdf   :  { %2438 = vmatmul.mubr.msk.f32.vlgmr.msra.gmra.mrb[8].mxu1 %vm51_vm3, %v3290_v63  ;;  %3034 = vmatprep.subr.bf16.mxu0 %v3033_v24  ;;  %v701_v24 = vld [vmem:[%s5197_s5 + $0x360] sm:$0xff]  ;;  %vm108_vm3 = vcmp.eq.s32.totalorder %v3576_v49, %v4263_v55 }
  0xe0   :  { %2439 = vmatprep.mubr.msk.f32.mxu1 %vm60_vm6, %v3290_v63  ;;  %3039 = vmatpush1.bf16.msra.mxu1 %v3038_v27  ;;  %v4366_v27 = vpack.c.bf16 %v1045_v23, %v1044_v21  ;;  %v3056_v30 = vpack.c.bf16 %v702_v25, %v701_v24  ;;  %v4476_v21 = vpack.c.bf16 %v1053_v15, %v1052_v11  ;;  %v1054_v23 = vld [vmem:[%s5198_s4 + $0x120] sm:$0xff]  ;;  %v1055_v24 = vld [vmem:[%s5198_s4 + $0x128] sm:$0xff]  ;;  %v2404_v25 = vsel %vm108_vm3, 1.0, %v3291_v13  ;;  %v1077_v15 = vld [vmem:[%s5198_s4 + $0x1d8] sm:$0xff] }
  0xe1   :  { %3040 = vmatprep.subr.bf16.mxu1 %v3289_v40  ;;  %vm109_vm6 = vcmp.eq.s32.totalorder %v3561_v44, %v4448_v9  ;;  %v1075_v11 = vld [vmem:[%s5198_s4 + $0x1c8] sm:$0xff] }
  0xe2   :  { %3036 = vmatpush3.bf16.msra.mxu0 %v3035_v32  ;;  %v1047_v32 = vld [vmem:[%s5198_s4 + $0xe8] sm:$0xff] }
  0xe3   :  { %2440 = vmatmul.mubr.msk.f32.gmra.mrb[10].mxu1 %vm59_vm8, %v3290_v63  ;;  %3080 = vmatprep.subr.bf16.mxu0 %v4215_v33  ;;  %v4391_v59 = vpack.c.bf16 %v1047_v32, %v1046_v31  ;;  %v4497_v31 = vpack.c.bf16 %v1055_v24, %v1054_v23  ;;  %v1056_v32 = vld [vmem:[%s5198_s4 + $0x130] sm:$0xff]  ;;  %vm137_vm8 = vcmp.eq.s32.totalorder %v3561_v44, %v4549_v3 }
  0xe4   :  { %3042 = vmatpush1.bf16.msra.mxu1 %v3041_v36  ;;  %2445 = vmatprep.mubr.msk.f32.mxu1 %vm286_vm9, %v3693_v14  ;;  %v695_v14 = vld [vmem:[%s5197_s5 + $0x330] sm:$0xff]  ;;  %v4388_v36 = vpack.c.bf16 %v1029_v29, %v1028_v28  ;;  %v713_v29 = vld [vmem:[%s5197_s5 + $0x3c0] sm:$0xff] }
  0xe5   :  { %2442 = vmatmul.mubr.msk.f32.vlgmr.msra.gmra.mrb[12].mxu0 %vm53_vm11, %v3290_v63  ;;  %3043 = vmatprep.subr.bf16.mxu1 %v3289_v40  ;;  %v3047_v5 = vpack.c.bf16 %v696_v56, %v695_v14  ;;  %v4416_v14 = vpack.c.bf16 %v1049_v47, %v1048_v46  ;;  %v1032_v56 = vld [vmem:[%s5198_s4 + $0x70] sm:$0xff]  ;;  %v1058_v46 = vld [vmem:[%s5198_s4 + $0x140] sm:$0xff]  ;;  %v1059_v47 = vld [vmem:[%s5198_s4 + $0x148] sm:$0xff] }
  0xe6   :  { %2443 = vmatprep.mubr.msk.f32.mxu0 %vm62_vm12, %v3290_v63  ;;  %3082 = vmatpush3.bf16.msra.mxu0 %v4240_v42  ;;  %v4432_v0 = vpack.c.bf16 %v1033_v60, %v1032_v56  ;;  %v1060_v56 = vld [vmem:[%s5198_s4 + $0x150] sm:$0xff]  ;;  %v1061_v60 = vld [vmem:[%s5198_s4 + $0x158] sm:$0xff]  ;;  %vm1088_vm12 = vcmask 1043456  }
  0xe7   :  { %3084 = vmatprep.subr.bf16.mxu0 %v4247_v45 }
  0xe8   :  { %3045 = vmatpush1.bf16.msra.mxu1 %v3044_v51  ;;  %v705_v51 = vld [vmem:[%s5197_s5 + $0x380] sm:$0xff] }
  0xe9   :  { %2444 = vmatmul.mubr.msk.f32.gmra.mrb[14].mxu0 %vm61_vm13, %v3290_v63  ;;  %3046 = vmatprep.subr.bf16.mxu1 %v3289_v40  ;;  %v3062_v61 = vpack.c.bf16 %v706_v52, %v705_v51  ;;  %v3077_v51 = vpack.c.bf16 %v716_v38, %v715_v37  ;;  %v4526_v52 = vpack.c.bf16 %v1059_v47, %v1058_v46  ;;  %v1399_v37 = vld [vmem:[%s5199_s6 + $0x8] sm:$0xff]  ;;  %v1398_v47 = vld [vmem:[%s5199_s6] sm:$0xff] }
  0xea   :  { %3086 = vmatpush3.bf16.msra.mxu0 %v4281_v57  ;;  %2449 = vmatprep.mubr.msk.f32.mxu0 %vm106_vm1, %v3290_v63  ;;  %vm107_vm13 = vcmp.eq.s32.totalorder %v3579_v50, %v4263_v55  ;;  %v1415_v38 = vld [vmem:[%s5199_s6 + $0x88] sm:$0x3]  ;;  %vm3292_vm1 = vmmov 1  }
  0xeb   :  { %3088 = vmatprep.subr.bf16.mxu0 %v4284_v58  ;;  %v3233_v46 = vpack.c.bf16 %v1415_v38, %v1399_v37  ;;  %v1403_v37 = vld [vmem:[%s5199_s6 + $0x28] sm:$0xff] }
  0xec   :  { %3048 = vmatpush1.bf16.msra.mxu1 %v3047_v5  ;;  %v707_v5 = vld [vmem:[%s5197_s5 + $0x390] sm:$0xff]  ;;  %v1419_v38 = vld [vmem:[%s5199_s6 + $0xa8] sm:$0x3] }
  0xed   :  { %3049 = vmatprep.subr.bf16.mxu1 %v3289_v40  ;;  %v3065_v6 = vpack.c.bf16 %v708_v62, %v707_v5  ;;  %v4540_v5 = vpack.c.bf16 %v1061_v60, %v1060_v56  ;;  %v1062_v62 = vld [vmem:[%s5198_s4 + $0x160] sm:$0xff]  ;;  %v1401_v56 = vld [vmem:[%s5199_s6 + $0x18] sm:$0xff] }
  0xee   :  { %3090 = vmatpush3.bf16.msra.mxu0 %v4312_v4  ;;  %v1417_v60 = vld [vmem:[%s5199_s6 + $0x98] sm:$0x3] }
  0xef   :  { %3092 = vmatprep.subr.bf16.mxu0 %v4316_v12 }
  0xf0   :  { %3051 = vmatpush1.bf16.msra.mxu1 %v3050_v8  ;;  %v710_v8 = vld [vmem:[%s5197_s5 + $0x3a8] sm:$0xff] }
  0xf1   :  { %3052 = vmatprep.subr.bf16.mxu1 %v3289_v40  ;;  %v3068_v18 = vpack.c.bf16 %v710_v8, %v709_v7  ;;  %v1064_v7 = vld [vmem:[%s5198_s4 + $0x170] sm:$0xff]  ;;  %v1073_v8 = vld [vmem:[%s5198_s4 + $0x1b8] sm:$0xff] }
  0xf2   :  { %3094 = vmatpush3.bf16.msra.mxu0 %v4338_v16 }
  0xf3   :  { %3096 = vmatprep.subr.bf16.mxu0 %v4341_v17 }
  0xf4   :  { %3054 = vmatpush1.bf16.msra.mxu1 %v3053_v20  ;;  %v712_v20 = vld [vmem:[%s5197_s5 + $0x3b8] sm:$0xff] }
  0xf5   :  { %3055 = vmatprep.subr.bf16.mxu1 %v3289_v40  ;;  %v3071_v28 = vpack.c.bf16 %v712_v20, %v711_v19  ;;  %v2408_v19 = vsel %vm112_vm14, 1.0, %v3291_v13 }
  0xf6   :  { %3098 = vmatpush3.bf16.msra.mxu0 %v4363_v26 }
  0xf7   :  { %3100 = vmatprep.subr.bf16.mxu0 %v4366_v27 }
  0xf8   :  { %3057 = vmatpush1.bf16.msra.mxu1 %v3056_v30  ;;  %v714_v30 = vld [vmem:[%s5197_s5 + $0x3c8] sm:$0xff] }
  0xf9   :  { %3058 = vmatprep.subr.bf16.mxu1 %v3289_v40  ;;  %v3074_v35 = vpack.c.bf16 %v714_v30, %v713_v29 }
  0xfa   :  { %3102 = vmatpush3.bf16.msra.mxu0 %v4388_v36 }
  0xfb   :  { %3104 = vmatprep.subr.bf16.mxu0 %v4391_v59 }
  0xfc   :  { %3060 = vmatpush1.bf16.msra.mxu1 %v3059_v41  ;;  %v4515_v41 = vpack.c.bf16 %v1057_v34, %v1056_v32 }
  0xfd   :  { %3061 = vmatprep.subr.bf16.mxu1 %v3289_v40 }
  0xfe   :  { %3106 = vmatpush3.bf16.msra.mxu0 %v4413_v53 }
  0xff   :  { %3108 = vmatprep.subr.bf16.mxu0 %v4416_v14 }
 0x100   :  { %3063 = vmatpush1.bf16.msra.mxu1 %v3062_v61  ;;  %v717_v61 = vld [vmem:[%s5197_s5 + $0x3e0] sm:$0xff] }
 0x101   :  { %3064 = vmatprep.subr.bf16.mxu1 %v3289_v40 }
 0x102   :  { %3110 = vmatpush3.bf16.msra.mxu0 %v4432_v0 }
 0x103   :  { %3111 = vmatprep.subr.bf16.mxu0 %v3289_v40 }
 0x104   :  { %3066 = vmatpush1.bf16.msra.mxu1 %v3065_v6  ;;  %v4559_v6 = vpack.c.bf16 %v1063_v1, %v1062_v62  ;;  %v1429_v62 = vld [vmem:[%s5199_s6 + $0xf8] sm:$0x3]  ;;  %v1412_v1 = vld [vmem:[%s5199_s6 + $0x70] sm:$0xff] }
 0x105   :  { %2450 = vmatmul.mubr.msk.f32.vlgmr.msra.gmra.mrb[16].mxu0 %vm105_vm2, %v3290_v63  ;;  %3067 = vmatprep.subr.bf16.mxu1 %v3289_v40 }
 0x106   :  { %2451 = vmatprep.mubr.msk.f32.mxu0 %vm110_vm4, %v3290_v63  ;;  %3113 = vmatpush1.bf16.msra.mxu0 %v4453_v10  ;;  %vm139_vm4 = vcmp.eq.s32.totalorder %v3579_v50, %v4549_v3 }
 0x107   :  { %3114 = vmatprep.subr.bf16.mxu0 %v3289_v40 }
 0x108   :  { %3069 = vmatpush1.bf16.msra.mxu1 %v3068_v18  ;;  %v4652_v18 = vpop.permute.xlu1 %135 }
 0x109   :  { %2452 = vmatmul.mubr.msk.f32.gmra.mrb[18].mxu0 %vm109_vm6, %v3290_v63  ;;  %3070 = vmatprep.subr.bf16.mxu1 %v3289_v40  ;;  %vm141_vm11 = vcmp.eq.s32.totalorder %v3561_v44, %v4652_v18  ;;  %vm144_vm3 = vcmp.eq.s32.totalorder %v3576_v49, %v4652_v18  ;;  %vm143_vm6 = vcmp.eq.s32.totalorder %v3579_v50, %v4652_v18 }
 0x10a   :  { %3116 = vmatpush1.bf16.msra.mxu0 %v4476_v21  ;;  %2454 = vmatprep.mubr.msk.f32.mxu0 %vm1081_vm5, %v2404_v25 }
 0x10b   :  { %3117 = vmatprep.subr.bf16.mxu0 %v3289_v40 }
 0x10c   :  { %3072 = vmatpush1.bf16.msra.mxu1 %v3071_v28 }
 0x10d   :  { %3073 = vmatprep.subr.bf16.mxu1 %v3289_v40 }
 0x10e   :  { %3119 = vmatpush1.bf16.msra.mxu0 %v4497_v31 }
 0x10f   :  { %3120 = vmatprep.subr.bf16.mxu0 %v3289_v40 }
 0x110   :  { %3075 = vmatpush1.bf16.msra.mxu1 %v3074_v35 }
 0x111   :  { %3076 = vmatprep.subr.bf16.mxu1 %v3289_v40 }
 0x112   :  { %3122 = vmatpush1.bf16.msra.mxu0 %v4515_v41 }
 0x113   :  { %3123 = vmatprep.subr.bf16.mxu0 %v3289_v40 }
 0x114   :  { %3078 = vmatpush1.bf16.msra.mxu1 %v3077_v51  ;;  %v1414_v51 = vld [vmem:[%s5199_s6 + $0x80] sm:$0x3] }
 0x115   :  { %999 = vmatprep.subr.mxu1 %v3291_v13 }
 0x116   :  { %3125 = vmatpush1.bf16.msra.mxu0 %v4526_v52 }
 0x117   :  { %3126 = vmatprep.subr.bf16.mxu0 %v3289_v40 }
 0x118   :  { %1000 = vmatpush1.msra.mxu1 %v717_v61  ;;  %v3239_v61 = vpack.c.bf16 %v1417_v60, %v1401_v56  ;;  %v3245_v56 = vpack.c.bf16 %v1419_v38, %v1403_v37 }
 0x119   :  { %2446 = vmatmul.mubr.msk.f32.vlgmr.msra.gmra.mrb[12].mxu1 %vm55_vm15, %v3290_v63  ;;  %3157 = vmatprep.subr.bf16.mxu1 %v4215_v33  ;;  %v1066_v33 = vld [vmem:[%s5198_s4 + $0x180] sm:$0xff]  ;;  %vm111_vm15 = vcmp.eq.s32.totalorder %v3579_v50, %v4448_v9 }
 0x11a   :  { %2447 = vmatprep.mubr.msk.f32.mxu1 %vm286_vm9, %v4000_v39  ;;  %3128 = vmatpush1.bf16.msra.mxu0 %v4540_v5  ;;  %v4577_v39 = vpack.c.bf16 %v1065_v54, %v1064_v7  ;;  %vm142_vm9 = vcmp.eq.s32.totalorder %v3573_v48, %v4652_v18  ;;  %v2412_v48 = vsel %vm140_vm10, 1.0, %v3291_v13  ;;  %v2416_v54 = vsel %vm144_vm3, 1.0, %v3291_v13 }
 0x11b   :  { %3159 = vmatpush3.bf16.msra.mxu1 %v4240_v42  ;;  %3129 = vmatprep.subr.bf16.mxu0 %v3289_v40  ;;  %v1067_v42 = vld [vmem:[%s5198_s4 + $0x188] sm:$0xff]  ;;  %vm2366_vm10 = vcmask 73728  }
 0x11c   :  { %3161 = vmatprep.subr.bf16.mxu1 %v4247_v45  ;;  %v4590_v2 = vpack.c.bf16 %v1067_v42, %v1066_v33  ;;  %v1069_v45 = vld [vmem:[%s5198_s4 + $0x198] sm:$0xff] }
 0x11d   :  { %2448 = vmatmul.mubr.msk.f32.gmra.mrb[14].mxu1 %vm63_vm0, %v3290_v63  ;;  %vm1437_vm0 = vcmask 1041408  }
 0x11e   :  { %3131 = vmatpush1.bf16.msra.mxu0 %v4559_v6  ;;  %2458 = vmatprep.mubr.msk.f32.mxu1 %vm138_vm7, %v3290_v63  ;;  %vm4726_vm2 = vmpackc.low %vm1437_vm0, %vm3292_vm1  ;;  %vm2104_vm7 = vcmask 162816  }
 0x11f   :  { %3163 = vmatpush3.bf16.msra.mxu1 %v4281_v57  ;;  %3132 = vmatprep.subr.bf16.mxu0 %v3289_v40  ;;  %v4602_v57 = vpack.c.bf16 %v1069_v45, %v1068_v22 }
 0x120   :  { %3165 = vmatprep.subr.bf16.mxu1 %v4284_v58  ;;  %v1070_v58 = vld [vmem:[%s5198_s4 + $0x1a0] sm:$0xff] }
 0x122   :  { %3134 = vmatpush1.bf16.msra.mxu0 %v4577_v39 }
 0x123   :  { %3167 = vmatpush3.bf16.msra.mxu1 %v4312_v4  ;;  %3135 = vmatprep.subr.bf16.mxu0 %v3289_v40  ;;  %v1071_v4 = vld [vmem:[%s5198_s4 + $0x1a8] sm:$0xff] }
 0x124   :  { %3169 = vmatprep.subr.bf16.mxu1 %v4316_v12  ;;  %v4614_v12 = vpack.c.bf16 %v1071_v4, %v1070_v58 }
 0x126   :  { %3137 = vmatpush1.bf16.msra.mxu0 %v4590_v2 }
 0x127   :  { %3171 = vmatpush3.bf16.msra.mxu1 %v4338_v16  ;;  %3138 = vmatprep.subr.bf16.mxu0 %v3289_v40  ;;  %v1072_v16 = vld [vmem:[%s5198_s4 + $0x1b0] sm:$0xff] }
 0x128   :  { %3173 = vmatprep.subr.bf16.mxu1 %v4341_v17  ;;  %v4626_v17 = vpack.c.bf16 %v1073_v8, %v1072_v16 }
 0x12a   :  { %3140 = vmatpush1.bf16.msra.mxu0 %v4602_v57 }
 0x12b   :  { %3175 = vmatpush3.bf16.msra.mxu1 %v4363_v26  ;;  %3141 = vmatprep.subr.bf16.mxu0 %v3289_v40  ;;  %v1074_v26 = vld [vmem:[%s5198_s4 + $0x1c0] sm:$0xff] }
 0x12c   :  { %3177 = vmatprep.subr.bf16.mxu1 %v4366_v27  ;;  %v4638_v27 = vpack.c.bf16 %v1075_v11, %v1074_v26 }
 0x12e   :  { %3143 = vmatpush1.bf16.msra.mxu0 %v4614_v12 }
 0x12f   :  { %3179 = vmatpush3.bf16.msra.mxu1 %v4388_v36  ;;  %3144 = vmatprep.subr.bf16.mxu0 %v3289_v40  ;;  %v1076_v36 = vld [vmem:[%s5198_s4 + $0x1d0] sm:$0xff] }
 0x130   :  { %3181 = vmatprep.subr.bf16.mxu1 %v4391_v59  ;;  %v4650_v59 = vpack.c.bf16 %v1077_v15, %v1076_v36 }
 0x132   :  { %3146 = vmatpush1.bf16.msra.mxu0 %v4626_v17 }
 0x133   :  { %3183 = vmatpush3.bf16.msra.mxu1 %v4413_v53  ;;  %3147 = vmatprep.subr.bf16.mxu0 %v3289_v40  ;;  %v1078_v53 = vld [vmem:[%s5198_s4 + $0x1e0] sm:$0xff] }
 0x134   :  { %3185 = vmatprep.subr.bf16.mxu1 %v4416_v14  ;;  %v1079_v14 = vld [vmem:[%s5198_s4 + $0x1e8] sm:$0xff] }
 0x136   :  { %3149 = vmatpush1.bf16.msra.mxu0 %v4638_v27 }
 0x137   :  { %3187 = vmatpush3.bf16.msra.mxu1 %v4432_v0  ;;  %3150 = vmatprep.subr.bf16.mxu0 %v3289_v40  ;;  %v4669_v0 = vpack.c.bf16 %v1079_v14, %v1078_v53 }
 0x138   :  { %3188 = vmatprep.subr.bf16.mxu1 %v3289_v40 }
 0x13a   :  { %3152 = vmatpush1.bf16.msra.mxu0 %v4650_v59  ;;  %2459 = vmatmul.mubr.msk.f32.vlgmr.msra.gmra.mrb[16].mxu1 %vm137_vm8, %v3290_v63  ;;  %vm2108_vm8 = vcmask 156672  }
 0x13b   :  { %3190 = vmatpush1.bf16.msra.mxu1 %v4453_v10  ;;  %3153 = vmatprep.subr.bf16.mxu0 %v3289_v40  ;;  %v4687_v10 = vld [vmem:[%s5198_s4 + $0x1f0] sm:$0xf] }
 0x13c   :  { %3191 = vmatprep.subr.bf16.mxu1 %v3289_v40  ;;  %2460 = vmatprep.mubr.msk.f32.mxu1 %vm142_vm9, %v3290_v63  ;;  %vm2363_vm9 = vcmask 130112  }
 0x13e   :  { %3155 = vmatpush1.bf16.msra.mxu0 %v4669_v0  ;;  %2461 = vmatmul.mubr.msk.f32.gmra.mrb[18].mxu1 %vm141_vm11, %v3290_v63 }
 0x13f   :  { %3193 = vmatpush1.bf16.msra.mxu1 %v4476_v21  ;;  %1227 = vmatprep.subr.mxu0 %v3291_v13 }
 0x140   :  { %3194 = vmatprep.subr.bf16.mxu1 %v3289_v40  ;;  %2463 = vmatprep.mubr.msk.f32.mxu1 %vm1081_vm5, %v2412_v48 }
 0x142   :  { %2453 = vmatpush1.msk.msra.mxu0 %vm1088_vm12, %v4687_v10 }
 0x143   :  { %3196 = vmatpush1.bf16.msra.mxu1 %v4497_v31  ;;  %2455 = vmatmul.mubr.msk.f32.vlgmr.msra.gmra.mrb[20].mxu0 %vm107_vm13, %v3290_v63 }
 0x144   :  { %2456 = vmatprep.mubr.msk.f32.mxu0 %vm1081_vm5, %v2408_v19  ;;  %3197 = vmatprep.subr.bf16.mxu1 %v3289_v40 }
 0x145   :  { %3235 = vmatprep.subr.msk.bf16.mxu0 %vm4726_vm2, %v3233_v46 }
 0x147   :  { %3199 = vmatpush1.bf16.msra.mxu1 %v4515_v41  ;;  %2457 = vmatmul.mubr.msk.f32.gmra.mrb[22].mxu0 %vm111_vm15, %v3290_v63 }
 0x148   :  { %3200 = vmatprep.subr.bf16.mxu1 %v3289_v40  ;;  %1550 = vmatprep.mubr.f32.mxu0 %v3291_v13 }
 0x14b   :  { %3202 = vmatpush1.bf16.msra.mxu1 %v4526_v52  ;;  %v3236_v52 = vpack.c.bf16 %v1414_v51, %v1398_v47 }
 0x14c   :  { %3203 = vmatprep.subr.bf16.mxu1 %v3289_v40 }
 0x14d   :  { %3238 = vmatpush1.bf16.msk.msra.mxu0 %vm4726_vm2, %v3236_v52 }
 0x14e   :  { %3241 = vmatprep.subr.msk.bf16.mxu0 %vm4726_vm2, %v3239_v61 }
 0x14f   :  { %3205 = vmatpush1.bf16.msra.mxu1 %v4540_v5  ;;  %v1413_v5 = vld [vmem:[%s5199_s6 + $0x78] sm:$0xff] }
 0x150   :  { %3206 = vmatprep.subr.bf16.mxu1 %v3289_v40 }
 0x153   :  { %3208 = vmatpush1.bf16.msra.mxu1 %v4559_v6  ;;  %v1428_v6 = vld [vmem:[%s5199_s6 + $0xf0] sm:$0x3] }
 0x154   :  { %3209 = vmatprep.subr.bf16.mxu1 %v3289_v40  ;;  %v3278_v7 = vpack.c.bf16 %v1428_v6, %v1412_v1  ;;  %v1418_v1 = vld [vmem:[%s5199_s6 + $0xa0] sm:$0x3]  ;;  %v1405_v6 = vld [vmem:[%s5199_s6 + $0x38] sm:$0xff] }
 0x157   :  { %3211 = vmatpush1.bf16.msra.mxu1 %v4577_v39  ;;  %v2531_v55 = vpop.f32.mrb[0].mxu0  ;;  %v2569_v9 = vpop.f32.mrb[0].mxu1 }
 0x158   :  { %3212 = vmatprep.subr.bf16.mxu1 %v3289_v40  ;;  %v2532_v20 = vpop.f32.mrb[1].mxu0  ;;  %v2570_v21 = vpop.f32.mrb[1].mxu1 }
 0x159   :  { %v2533_v23 = vadd.f32 %v2532_v20, %v2531_v55  ;;  %v2571_v24 = vadd.f32 %v2570_v21, %v2569_v9 }
 0x15b   :  { %v435_v25 = vadd.f32 %v2571_v24, %v2533_v23  ;;  %3214 = vmatpush1.bf16.msra.mxu1 %v4590_v2  ;;  %v2534_v28 = vpop.f32.mrb[2].mxu0  ;;  %v2572_v29 = vpop.f32.mrb[2].mxu1 }
 0x15c   :  { %3215 = vmatprep.subr.bf16.mxu1 %v3289_v40  ;;  %v2535_v30 = vpop.f32.mrb[3].mxu0  ;;  %v2573_v31 = vpop.f32.mrb[3].mxu1 }
 0x15d   :  { %v2536_v32 = vadd.f32 %v2535_v30, %v2534_v28  ;;  %v2574_v34 = vadd.f32 %v2573_v31, %v2572_v29 }
 0x15f   :  { %v440_v35 = vadd.f32 %v2574_v34, %v2536_v32  ;;  %3217 = vmatpush1.bf16.msra.mxu1 %v4602_v57  ;;  %v1400_v34 = vld [vmem:[%s5199_s6 + $0x10] sm:$0xff] }
 0x160   :  { %3218 = vmatprep.subr.bf16.mxu1 %v3289_v40 }
 0x163   :  { %3220 = vmatpush1.bf16.msra.mxu1 %v4614_v12 }
 0x164   :  { %3221 = vmatprep.subr.bf16.mxu1 %v3289_v40 }
 0x167   :  { %3223 = vmatpush1.bf16.msra.mxu1 %v4626_v17 }
 0x168   :  { %3224 = vmatprep.subr.bf16.mxu1 %v3289_v40 }
 0x16b   :  { %3226 = vmatpush1.bf16.msra.mxu1 %v4638_v27 }
 0x16c   :  { %3227 = vmatprep.subr.bf16.mxu1 %v3289_v40 }
 0x16f   :  { %3229 = vmatpush1.bf16.msra.mxu1 %v4650_v59 }
 0x170   :  { %3230 = vmatprep.subr.bf16.mxu1 %v3289_v40  ;;  %v3275_v40 = vpack.c.bf16 %v1429_v62, %v1413_v5  ;;  %v1402_v62 = vld [vmem:[%s5199_s6 + $0x20] sm:$0xff] }
 0x173   :  { %3232 = vmatpush1.bf16.msra.mxu1 %v4669_v0 }
 0x174   :  { %1383 = vmatprep.subr.mxu1 %v3291_v13 }
 0x177   :  { %2462 = vmatpush1.msk.msra.mxu1 %vm1088_vm12, %v4687_v10  ;;  %v2607_v39 = vpop.f32.mrb[4].mxu0 }
 0x178   :  { %2464 = vmatmul.mubr.msk.f32.vlgmr.msra.gmra.mrb[20].mxu1 %vm139_vm4, %v3290_v63  ;;  %v2608_v33 = vpop.f32.mrb[5].mxu0  ;;  %3277 = vmatprep.subr.msk.bf16.mxu1 %vm4726_vm2, %v3275_v40  ;;  %v1421_v40 = vld [vmem:[%s5199_s6 + $0xb8] sm:$0x3] }
 0x179   :  { %v2609_v49 = vadd.f32 %v2608_v33, %v2607_v39  ;;  %2465 = vmatprep.mubr.msk.f32.mxu1 %vm1081_vm5, %v2416_v54  ;;  %3280 = vmatpush1.bf16.msk.msra.mxu1 %vm4726_vm2, %v3278_v7  ;;  %vm1430_vm5 = vcmask 80896   ;;  %v3248_v7 = vpack.c.bf16 %v1418_v1, %v1402_v62  ;;  %v3251_v54 = vpack.c.bf16 %v1421_v40, %v1405_v6  ;;  %v1404_v39 = vld [vmem:[%s5199_s6 + $0x30] sm:$0xff]  ;;  %v2128_v40 = vld [vmem:[%s5200_s7 + $0x80] sm:$0x3] }
 0x17a   :  { %v1420_v33 = vld [vmem:[%s5199_s6 + $0xb0] sm:$0x3] }
 0x17b   :  { %v2610_v3 = vpop.f32.mrb[6].mxu0  ;;  %v510_v42 = vadd.f32 %v2609_v49, %v435_v25  ;;  %v1407_v49 = vld [vmem:[%s5199_s6 + $0x48] sm:$0xff] }
 0x17c   :  { %2466 = vmatmul.mubr.msk.f32.gmra.mrb[22].mxu1 %vm143_vm6, %v3290_v63  ;;  %v2611_v2 = vpop.f32.mrb[7].mxu0 }
 0x17d   :  { %v2612_v22 = vadd.f32 %v2611_v2, %v2610_v3  ;;  %2089 = vmatprep.mubr.f32.mxu1 %v3291_v13  ;;  %v1423_v3 = vld [vmem:[%s5199_s6 + $0xc8] sm:$0x3] }
 0x17e   :  { %v3257_v2 = vpack.c.bf16 %v1423_v3, %v1407_v49 }
 0x17f   :  { %v515_v45 = vadd.f32 %v2612_v22, %v440_v35  ;;  %v1416_v35 = vld [vmem:[%s5199_s6 + $0x90] sm:$0x3]  ;;  %v1406_v22 = vld [vmem:[%s5199_s6 + $0x40] sm:$0xff] }
 0x180   :  { %v3242_v47 = vpack.c.bf16 %v1416_v35, %v1400_v34 }
 0x191   :  { %v584_v57 = vpop.f32.mrb[4].mxu1 }
 0x192   :  { %v4788_v58 = vadd.f32 %v584_v57, %v510_v42  ;;  %v586_v4 = vpop.f32.mrb[5].mxu1  ;;  %v3254_v42 = vpack.c.bf16 %v1420_v33, %v1404_v39  ;;  %v1409_v57 = vld [vmem:[%s5199_s6 + $0x58] sm:$0xff]  ;;  %v2253_v39 = vld [vmem:[%s5201_s8 + $0x88] sm:$0x3] }
 0x193   :  { %v1425_v4 = vld [vmem:[%s5199_s6 + $0xd8] sm:$0x3] }
 0x195   :  { %v589_v12 = vpop.f32.mrb[6].mxu1 }
 0x196   :  { %v4790_v16 = vadd.f32 %v589_v12, %v515_v45  ;;  %v591_v50 = vpop.f32.mrb[7].mxu1  ;;  %v1422_v45 = vld [vmem:[%s5199_s6 + $0xc0] sm:$0x3] }
 0x197   :  { %v3260_v12 = vpack.c.bf16 %v1422_v45, %v1406_v22  ;;  %v3263_v50 = vpack.c.bf16 %v1425_v4, %v1409_v57 }
 0x198   :  { %v2645_v8 = vpop.f32.mrb[8].mxu0 }
 0x199   :  { %v2646_v17 = vpop.f32.mrb[9].mxu0 }
 0x19a   :  { %v2647_v26 = vadd.f32 %v2646_v17, %v2645_v8  ;;  %v1408_v8 = vld [vmem:[%s5199_s6 + $0x50] sm:$0xff] }
 0x19b   :  { %v1424_v17 = vld [vmem:[%s5199_s6 + $0xd0] sm:$0x3] }
 0x19c   :  { %v2648_v11 = vpop.f32.mrb[10].mxu0 }
 0x19d   :  { %v2649_v27 = vpop.f32.mrb[11].mxu0 }
 0x19e   :  { %v2650_v36 = vadd.f32 %v2649_v27, %v2648_v11  ;;  %v1427_v11 = vld [vmem:[%s5199_s6 + $0xe8] sm:$0x3]  ;;  %v3266_v27 = vpack.c.bf16 %v1424_v17, %v1408_v8  ;;  %v2238_v8 = vld [vmem:[%s5201_s8 + $0x10] sm:$0xff] }
 0x1b2   :  { %v2683_v63 = vpop.f32.mrb[8].mxu1 }
 0x1b3   :  { %v2684_v15 = vpop.f32.mrb[9].mxu1 }
 0x1b4   :  { %v2685_v59 = vadd.f32 %v2684_v15, %v2683_v63 }
 0x1b6   :  { %v860_v18 = vadd.f32 %v2685_v59, %v2647_v26  ;;  %v2686_v53 = vpop.f32.mrb[10].mxu1  ;;  %v1411_v26 = vld [vmem:[%s5199_s6 + $0x68] sm:$0xff] }
 0x1b7   :  { %v2687_v14 = vpop.f32.mrb[11].mxu1 }
 0x1b8   :  { %v2688_v0 = vadd.f32 %v2687_v14, %v2686_v53  ;;  %v2721_v48 = vpop.f32.mrb[12].mxu0  ;;  %v1426_v53 = vld [vmem:[%s5199_s6 + $0xe0] sm:$0x3] }
 0x1b9   :  { %v2722_v10 = vpop.f32.mrb[13].mxu0 }
 0x1ba   :  { %v865_v19 = vadd.f32 %v2688_v0, %v2650_v36  ;;  %v2723_v55 = vadd.f32 %v2722_v10, %v2721_v48  ;;  %v3269_v36 = vpack.c.bf16 %v1427_v11, %v1411_v26  ;;  %v2115_v11 = vld [vmem:[%s5200_s7 + $0x18] sm:$0xff] }
 0x1bc   :  { %v2724_v9 = vpop.f32.mrb[14].mxu0  ;;  %v935_v20 = vadd.f32 %v2723_v55, %v860_v18  ;;  %v1410_v18 = vld [vmem:[%s5199_s6 + $0x60] sm:$0xff] }
 0x1bd   :  { %v2725_v21 = vpop.f32.mrb[15].mxu0  ;;  %v3272_v10 = vpack.c.bf16 %v1426_v53, %v1410_v18 }
 0x1be   :  { %v2726_v23 = vadd.f32 %v2725_v21, %v2724_v9 }
 0x1c0   :  { %v940_v24 = vadd.f32 %v2726_v23, %v865_v19 }
 0x1d8   :  { %v2759_v25 = vpop.f32.mrb[16].mxu0 }
 0x1d9   :  { %v2760_v28 = vpop.f32.mrb[17].mxu0 }
 0x1da   :  { %v4792_v29 = vadd.f32 %v2760_v28, %v2759_v25 }
 0x1dc   :  { %v2762_v30 = vpop.f32.mrb[18].mxu0 }
 0x1dd   :  { %v2763_v31 = vpop.f32.mrb[19].mxu0 }
 0x1de   :  { %v4794_v32 = vadd.f32 %v2763_v31, %v2762_v30 }
 0x1ec   :  { %v1009_v46 = vpop.f32.mrb[12].mxu1 }
 0x1ed   :  { %v4808_v51 = vadd.f32 %v1009_v46, %v935_v20  ;;  %v1011_v52 = vpop.f32.mrb[13].mxu1 }
 0x1ee   :  { %v2237_v52 = vld [vmem:[%s5201_s8 + $0x8] sm:$0xff] }
 0x1ef   :  { %2469 = vmatmul.mubr.msk.f32.vlgmr.msra.gmra.mrb[24].mxu0 %vm1430_vm5, %v4808_v51  ;;  %2497 = vmatmul.mubr.msk.f32.vlgmr.msra.gmra.mrb[24].mxu1 %vm1430_vm5, %v4808_v51 }
 0x1f0   :  { %3244 = vmatpush1.bf16.msk.msra.mxu0 %vm4726_vm2, %v3242_v47  ;;  %v1014_v60 = vpop.f32.mrb[14].mxu1  ;;  %1556 = vmatprep.mubr.f32.mxu0 %v3291_v13 }
 0x1f1   :  { %v4817_v61 = vadd.f32 %v1014_v60, %v940_v24  ;;  %v1016_v5 = vpop.f32.mrb[15].mxu1  ;;  %2095 = vmatprep.mubr.f32.mxu1 %v3291_v13  ;;  %3247 = vmatprep.subr.msk.bf16.mxu0 %vm4726_vm2, %v3245_v56 }
 0x1f3   :  { %2470 = vmatmul.mubr.msk.f32.gmra.mrb[26].mxu0 %vm1430_vm5, %v4817_v61  ;;  %2498 = vmatmul.mubr.msk.f32.gmra.mrb[26].mxu1 %vm1430_vm5, %v4817_v61 }
 0x1f4   :  { %1627 = vmatprep.mubr.f32.mxu0 %v3291_v13 }
 0x1f7   :  { %2473 = vmatmul.mubr.msk.f32.vlgmr.msra.gmra.mrb[28].mxu0 %vm1430_vm5, %v4808_v51 }
 0x1f8   :  { %3250 = vmatpush1.bf16.msk.msra.mxu0 %vm4726_vm2, %v3248_v7  ;;  %1633 = vmatprep.mubr.f32.mxu0 %v3291_v13  ;;  %v2252_v7 = vld [vmem:[%s5201_s8 + $0x80] sm:$0x3] }
 0x1f9   :  { %3253 = vmatprep.subr.msk.bf16.mxu0 %vm4726_vm2, %v3251_v54  ;;  %v2129_v54 = vld [vmem:[%s5200_s7 + $0x88] sm:$0x3] }
 0x1fb   :  { %2474 = vmatmul.mubr.msk.f32.gmra.mrb[30].mxu0 %vm1430_vm5, %v4817_v61 }
 0x1fc   :  { %1704 = vmatprep.mubr.f32.mxu0 %v3291_v13 }
 0x1ff   :  { %2477 = vmatmul.mubr.msk.f32.vlgmr.msra.gmra.mrb[32].mxu0 %vm1430_vm5, %v4808_v51 }
 0x200   :  { %3256 = vmatpush1.bf16.msk.msra.mxu0 %vm4726_vm2, %v3254_v42  ;;  %1710 = vmatprep.mubr.f32.mxu0 %v3291_v13 }
 0x201   :  { %3259 = vmatprep.subr.msk.bf16.mxu0 %vm4726_vm2, %v3257_v2 }
 0x203   :  { %2478 = vmatmul.mubr.msk.f32.gmra.mrb[34].mxu0 %vm1430_vm5, %v4817_v61 }
 0x204   :  { %1781 = vmatprep.mubr.f32.mxu0 %v3291_v13 }
 0x207   :  { %2481 = vmatmul.mubr.msk.f32.vlgmr.msra.gmra.mrb[36].mxu0 %vm1430_vm5, %v4808_v51 }
 0x208   :  { %3262 = vmatpush1.bf16.msk.msra.mxu0 %vm4726_vm2, %v3260_v12  ;;  %1787 = vmatprep.mubr.f32.mxu0 %v3291_v13 }
 0x209   :  { %3265 = vmatprep.subr.msk.bf16.mxu0 %vm4726_vm2, %v3263_v50  ;;  %v2114_v50 = vld [vmem:[%s5200_s7 + $0x10] sm:$0xff] }
 0x20b   :  { %2482 = vmatmul.mubr.msk.f32.gmra.mrb[38].mxu0 %vm1430_vm5, %v4817_v61 }
 0x20c   :  { %1858 = vmatprep.mubr.f32.mxu0 %v3291_v13 }
 0x20d   :  { %v2797_v63 = vpop.f32.mrb[16].mxu1 }
 0x20e   :  { %v2798_v15 = vpop.f32.mrb[17].mxu1 }
 0x20f   :  { %2485 = vmatmul.mubr.msk.f32.vlgmr.msra.gmra.mrb[40].mxu0 %vm1430_vm5, %v4808_v51  ;;  %v2799_v59 = vadd.f32 %v2798_v15, %v2797_v63 }
 0x210   :  { %3268 = vmatpush1.bf16.msk.msra.mxu0 %vm4726_vm2, %v3266_v27  ;;  %1864 = vmatprep.mubr.f32.mxu0 %v3291_v13  ;;  %v2239_v27 = vld [vmem:[%s5201_s8 + $0x18] sm:$0xff] }
 0x211   :  { %3271 = vmatprep.subr.msk.bf16.mxu0 %vm4726_vm2, %v3269_v36  ;;  %v2800_v14 = vpop.f32.mrb[18].mxu1 }
 0x212   :  { %v2801_v0 = vpop.f32.mrb[19].mxu1 }
 0x213   :  { %2486 = vmatmul.mubr.msk.f32.gmra.mrb[42].mxu0 %vm1430_vm5, %v4817_v61  ;;  %v2802_v48 = vadd.f32 %v2801_v0, %v2800_v14 }
 0x214   :  { %1935 = vmatprep.mubr.f32.mxu0 %v3291_v13 }
 0x216   :  { %v1233_v19 = vpop.f32.mrb[20].mxu0 }
 0x217   :  { %v1234_v55 = vadd.f32 %v4792_v29, %v1233_v19  ;;  %2489 = vmatmul.mubr.msk.f32.vlgmr.msra.gmra.mrb[44].mxu0 %vm1430_vm5, %v4808_v51  ;;  %v1235_v9 = vpop.f32.mrb[21].mxu0  ;;  %v2130_v19 = vld [vmem:[%s5200_s7 + $0x90] sm:$0x3] }
 0x218   :  { %3274 = vmatpush1.bf16.msk.msra.mxu0 %vm4726_vm2, %v3272_v10  ;;  %1941 = vmatprep.mubr.f32.mxu0 %v3291_v13 }
 0x219   :  { %v2102_v20 = vmul.f32 %v1234_v55, %v4788_v58  ;;  %v2254_v55 = vld [vmem:[%s5201_s8 + $0x90] sm:$0x3] }
 0x21a   :  { %v1238_v21 = vpop.f32.mrb[22].mxu0 }
 0x21b   :  { %v1239_v23 = vadd.f32 %v4794_v32, %v1238_v21  ;;  %v1240_v24 = vpop.f32.mrb[23].mxu0  ;;  %2490 = vmatmul.mubr.msk.f32.gmra.mrb[46].mxu0 %vm1430_vm5, %v4817_v61  ;;  %v2105_v25 = vsel %vm2104_vm7, %v2102_v20, 0.0  ;;  %v2131_v21 = vld [vmem:[%s5200_s7 + $0x98] sm:$0x3] }
 0x21c   :  { %2106 = vadd.xlane.f32.xlu0 %v2105_v25  ;;  %2012 = vmatprep.mubr.f32.mxu0 %v3291_v13 }
 0x21d   :  { %v2103_v41 = vmul.f32 %v1239_v23, %v4790_v16  ;;  %v2255_v23 = vld [vmem:[%s5201_s8 + $0x98] sm:$0x3] }
 0x21f   :  { %2493 = vmatmul.mubr.msk.f32.vlgmr.msra.gmra.mrb[48].mxu0 %vm1430_vm5, %v4808_v51  ;;  %v2109_v28 = vsel %vm2108_vm8, %v2103_v41, 0.0  ;;  %v2236_v51 = vld [vmem:[%s5201_s8] sm:$0xff] }
 0x220   :  { %2110 = vadd.xlane.f32.xlu1 %v2109_v28  ;;  %2018 = vmatprep.mubr.f32.mxu0 %v3291_v13  ;;  %v2112_v13 = vld [vmem:[%s5200_s7] sm:$0xff] }
 0x223   :  { %2494 = vmatmul.mubr.msk.f32.gmra.mrb[50].mxu0 %vm1430_vm5, %v4817_v61 }
 0x24b   :  { %v1389_v29 = vpop.f32.mrb[20].mxu1 }
 0x24c   :  { %v1390_v30 = vadd.f32 %v2799_v59, %v1389_v29  ;;  %v1391_v31 = vpop.f32.mrb[21].mxu1 }
 0x24e   :  { %v2228_v32 = vmul.f32 %v1390_v30, %v4788_v58  ;;  %v2113_v58 = vld [vmem:[%s5200_s7 + $0x8] sm:$0xff] }
 0x24f   :  { %v1394_v34 = vpop.f32.mrb[22].mxu1 }
 0x250   :  { %v1395_v35 = vadd.f32 %v2802_v48, %v1394_v34  ;;  %v2230_v37 = vsel %vm2104_vm7, %v2228_v32, 0.0  ;;  %v1396_v38 = vpop.f32.mrb[23].mxu1  ;;  %v2116_v34 = vld [vmem:[%s5200_s7 + $0x20] sm:$0xff] }
 0x251   :  { %2231 = vadd.xlane.f32.xlu1 %v2230_v37 }
 0x252   :  { %v2229_v46 = vmul.f32 %v1395_v35, %v4790_v16  ;;  %v2240_v35 = vld [vmem:[%s5201_s8 + $0x20] sm:$0xff] }
 0x254   :  { %v2233_v47 = vsel %vm2108_vm8, %v2229_v46, 0.0  ;;  %v2117_v46 = vld [vmem:[%s5200_s7 + $0x28] sm:$0xff] }
 0x255   :  { %2234 = vadd.xlane.f32.xlu0 %v2233_v47  ;;  %v2241_v47 = vld [vmem:[%s5201_s8 + $0x28] sm:$0xff] }
 0x2c2   :  { %v1552_v16 = vpop.f32.mrb[24].mxu0  ;;  %v4956_v56 = vpop.f32.mrb[24].mxu1 }
 0x2c3   :  { %v2144_v60 = vmul.f32 %v2112_v13, %v1552_v16  ;;  %v2268_v61 = vmul.f32 %v2236_v51, %v1552_v16  ;;  %v1554_v5 = vpop.f32.mrb[25].mxu0  ;;  %v4958_v62 = vpop.f32.mrb[25].mxu1 }
 0x2c4   :  { %v2145_v1 = vmul.f32 %v2113_v58, %v1554_v5  ;;  %v2269_v6 = vmul.f32 %v2237_v52, %v1554_v5 }
 0x2c6   :  { %v2176_v33 = vadd.f32 %v2145_v1, %v2144_v60  ;;  %v2300_v49 = vadd.f32 %v2269_v6, %v2268_v61  ;;  %v1558_v3 = vpop.f32.mrb[26].mxu0  ;;  %v4972_v42 = vpop.f32.mrb[26].mxu1 }
 0x2c7   :  { %v2160_v2 = vmul.f32 %v2128_v40, %v1558_v3  ;;  %v2284_v22 = vmul.f32 %v2252_v7, %v1558_v3  ;;  %v1560_v45 = vpop.f32.mrb[27].mxu0  ;;  %v4974_v57 = vpop.f32.mrb[27].mxu1  ;;  %v2133_v3 = vld [vmem:[%s5200_s7 + $0xa8] sm:$0x3] }
 0x2c8   :  { %v2161_v4 = vmul.f32 %v2129_v54, %v1560_v45  ;;  %v2285_v12 = vmul.f32 %v2253_v39, %v1560_v45  ;;  %v2132_v54 = vld [vmem:[%s5200_s7 + $0xa0] sm:$0x3] }
 0x2c9   :  { %v2193_v17 = vsel %vm1437_vm0, %v2160_v2, 0.0  ;;  %v2317_v26 = vsel %vm1437_vm0, %v2284_v22, 0.0  ;;  %v2256_v39 = vld [vmem:[%s5201_s8 + $0xa0] sm:$0x3]  ;;  %v2257_v2 = vld [vmem:[%s5201_s8 + $0xa8] sm:$0x3] }
 0x2ca   :  { %v2194_v36 = vsel %vm1437_vm0, %v2161_v4, 0.0  ;;  %v2318_v63 = vsel %vm1437_vm0, %v2285_v12, 0.0  ;;  %v1629_v15 = vpop.f32.mrb[28].mxu0 }
 0x2cb   :  { %v2195_v59 = vadd.f32 %v2194_v36, %v2193_v17  ;;  %v2319_v18 = vadd.f32 %v2318_v63, %v2317_v26  ;;  %v2146_v53 = vmul.f32 %v2114_v50, %v1629_v15  ;;  %v2270_v14 = vmul.f32 %v2238_v8, %v1629_v15  ;;  %v1631_v0 = vpop.f32.mrb[29].mxu0  ;;  %v2119_v15 = vld [vmem:[%s5200_s7 + $0x38] sm:$0xff] }
 0x2cc   :  { %v2147_v48 = vmul.f32 %v2115_v11, %v1631_v0  ;;  %v2271_v10 = vmul.f32 %v2239_v27, %v1631_v0  ;;  %v2118_v11 = vld [vmem:[%s5200_s7 + $0x30] sm:$0xff] }
 0x2cd   :  { %v2177_v9 = vadd.f32 %v2176_v33, %v2146_v53  ;;  %v2301_v20 = vadd.f32 %v2300_v49, %v2270_v14  ;;  %v2242_v27 = vld [vmem:[%s5201_s8 + $0x30] sm:$0xff] }
 0x2ce   :  { %v1635_v24 = vpop.f32.mrb[30].mxu0 }
 0x2cf   :  { %v2178_v25 = vadd.f32 %v2177_v9, %v2147_v48  ;;  %v2302_v41 = vadd.f32 %v2301_v20, %v2271_v10  ;;  %v2162_v28 = vmul.f32 %v2130_v19, %v1635_v24  ;;  %v2286_v29 = vmul.f32 %v2254_v55, %v1635_v24  ;;  %v1637_v30 = vpop.f32.mrb[31].mxu0  ;;  %v2134_v24 = vld [vmem:[%s5200_s7 + $0xb0] sm:$0x3] }
 0x2d0   :  { %v2163_v31 = vmul.f32 %v2131_v21, %v1637_v30  ;;  %v2287_v32 = vmul.f32 %v2255_v23, %v1637_v30  ;;  %v2259_v30 = vld [vmem:[%s5201_s8 + $0xb8] sm:$0x3] }
 0x2d1   :  { %v2196_v37 = vsel %vm1437_vm0, %v2162_v28, 0.0  ;;  %v2320_v38 = vsel %vm1437_vm0, %v2286_v29, 0.0  ;;  %v2135_v29 = vld [vmem:[%s5200_s7 + $0xb8] sm:$0x3] }
 0x2d2   :  { %v2197_v13 = vadd.f32 %v2196_v37, %v2195_v59  ;;  %v2321_v51 = vadd.f32 %v2320_v38, %v2319_v18  ;;  %v2198_v58 = vsel %vm1437_vm0, %v2163_v31, 0.0  ;;  %v2322_v52 = vsel %vm1437_vm0, %v2287_v32, 0.0  ;;  %v1706_v16 = vpop.f32.mrb[32].mxu0  ;;  %v2243_v59 = vld [vmem:[%s5201_s8 + $0x38] sm:$0xff] }
 0x2d3   :  { %v2148_v60 = vmul.f32 %v2116_v34, %v1706_v16  ;;  %v2272_v61 = vmul.f32 %v2240_v35, %v1706_v16  ;;  %v1708_v5 = vpop.f32.mrb[33].mxu0  ;;  %v2121_v16 = vld [vmem:[%s5200_s7 + $0x48] sm:$0xff] }
 0x2d4   :  { %v2199_v1 = vadd.f32 %v2198_v58, %v2197_v13  ;;  %v2323_v6 = vadd.f32 %v2322_v52, %v2321_v51  ;;  %v2149_v40 = vmul.f32 %v2117_v46, %v1708_v5  ;;  %v2273_v7 = vmul.f32 %v2241_v47, %v1708_v5  ;;  %v2120_v13 = vld [vmem:[%s5200_s7 + $0x40] sm:$0xff] }
 0x2d5   :  { %v2179_v33 = vadd.f32 %v2178_v25, %v2148_v60  ;;  %v2303_v49 = vadd.f32 %v2302_v41, %v2272_v61  ;;  %v2258_v25 = vld [vmem:[%s5201_s8 + $0xb0] sm:$0x3]  ;;  %v2244_v51 = vld [vmem:[%s5201_s8 + $0x40] sm:$0xff]  ;;  %v2245_v60 = vld [vmem:[%s5201_s8 + $0x48] sm:$0xff] }
 0x2d6   :  { %v1712_v22 = vpop.f32.mrb[34].mxu0 }
 0x2d7   :  { %v2180_v45 = vadd.f32 %v2179_v33, %v2149_v40  ;;  %v2304_v4 = vadd.f32 %v2303_v49, %v2273_v7  ;;  %v2164_v12 = vmul.f32 %v2132_v54, %v1712_v22  ;;  %v2288_v50 = vmul.f32 %v2256_v39, %v1712_v22  ;;  %v1714_v8 = vpop.f32.mrb[35].mxu0  ;;  %v2136_v22 = vld [vmem:[%s5200_s7 + $0xc0] sm:$0x3] }
 0x2d8   :  { %v2165_v17 = vmul.f32 %v2133_v3, %v1714_v8  ;;  %v2289_v26 = vmul.f32 %v2257_v2, %v1714_v8  ;;  %v2261_v8 = vld [vmem:[%s5201_s8 + $0xc8] sm:$0x3] }
 0x2d9   :  { %v2200_v36 = vsel %vm1437_vm0, %v2164_v12, 0.0  ;;  %v2324_v63 = vsel %vm1437_vm0, %v2288_v50, 0.0  ;;  %v2137_v50 = vld [vmem:[%s5200_s7 + $0xc8] sm:$0x3] }
 0x2da   :  { %v2201_v18 = vadd.f32 %v2200_v36, %v2199_v1  ;;  %v2325_v53 = vadd.f32 %v2324_v63, %v2323_v6  ;;  %v2202_v14 = vsel %vm1437_vm0, %v2165_v17, 0.0  ;;  %v2326_v0 = vsel %vm1437_vm0, %v2289_v26, 0.0  ;;  %v1783_v48 = vpop.f32.mrb[36].mxu0 }
 0x2db   :  { %v2150_v10 = vmul.f32 %v2118_v11, %v1783_v48  ;;  %v2274_v19 = vmul.f32 %v2242_v27, %v1783_v48  ;;  %v1785_v55 = vpop.f32.mrb[37].mxu0  ;;  %v2123_v48 = vld [vmem:[%s5200_s7 + $0x58] sm:$0xff] }
 0x2dc   :  { %v2203_v9 = vadd.f32 %v2202_v14, %v2201_v18  ;;  %v2327_v20 = vadd.f32 %v2326_v0, %v2325_v53  ;;  %v2151_v21 = vmul.f32 %v2119_v15, %v1785_v55  ;;  %v2275_v23 = vmul.f32 %v2243_v59, %v1785_v55  ;;  %v2122_v18 = vld [vmem:[%s5200_s7 + $0x50] sm:$0xff] }
 0x2dd   :  { %v2181_v41 = vadd.f32 %v2180_v45, %v2150_v10  ;;  %v2305_v28 = vadd.f32 %v2304_v4, %v2274_v19  ;;  %v2260_v45 = vld [vmem:[%s5201_s8 + $0xc0] sm:$0x3]  ;;  %v2246_v53 = vld [vmem:[%s5201_s8 + $0x50] sm:$0xff]  ;;  %v2247_v10 = vld [vmem:[%s5201_s8 + $0x58] sm:$0xff] }
 0x2de   :  { %v1789_v31 = vpop.f32.mrb[38].mxu0 }
 0x2df   :  { %v2182_v32 = vadd.f32 %v2181_v41, %v2151_v21  ;;  %v2306_v34 = vadd.f32 %v2305_v28, %v2275_v23  ;;  %v2166_v35 = vmul.f32 %v2134_v24, %v1789_v31  ;;  %v2290_v37 = vmul.f32 %v2258_v25, %v1789_v31  ;;  %v1791_v38 = vpop.f32.mrb[39].mxu0  ;;  %v2138_v31 = vld [vmem:[%s5200_s7 + $0xd0] sm:$0x3] }
 0x2e0   :  { %v2167_v46 = vmul.f32 %v2135_v29, %v1791_v38  ;;  %v2291_v47 = vmul.f32 %v2259_v30, %v1791_v38  ;;  %v2263_v38 = vld [vmem:[%s5201_s8 + $0xd8] sm:$0x3] }
 0x2e1   :  { %v2204_v58 = vsel %vm1437_vm0, %v2166_v35, 0.0  ;;  %v2328_v52 = vsel %vm1437_vm0, %v2290_v37, 0.0  ;;  %v2139_v37 = vld [vmem:[%s5200_s7 + $0xd8] sm:$0x3] }
 0x2e2   :  { %v2205_v61 = vadd.f32 %v2204_v58, %v2203_v9  ;;  %v2329_v5 = vadd.f32 %v2328_v52, %v2327_v20  ;;  %v2206_v1 = vsel %vm1437_vm0, %v2167_v46, 0.0  ;;  %v2330_v6 = vsel %vm1437_vm0, %v2291_v47, 0.0  ;;  %v1860_v40 = vpop.f32.mrb[40].mxu0 }
 0x2e3   :  { %v2152_v7 = vmul.f32 %v2120_v13, %v1860_v40  ;;  %v2276_v54 = vmul.f32 %v2244_v51, %v1860_v40  ;;  %v1862_v39 = vpop.f32.mrb[41].mxu0  ;;  %v2125_v40 = vld [vmem:[%s5200_s7 + $0x68] sm:$0xff] }
 0x2e4   :  { %v2207_v33 = vadd.f32 %v2206_v1, %v2205_v61  ;;  %v2331_v49 = vadd.f32 %v2330_v6, %v2329_v5  ;;  %v2153_v3 = vmul.f32 %v2121_v16, %v1862_v39  ;;  %v2277_v2 = vmul.f32 %v2245_v60, %v1862_v39  ;;  %v2124_v61 = vld [vmem:[%s5200_s7 + $0x60] sm:$0xff] }
 0x2e5   :  { %v2183_v4 = vadd.f32 %v2182_v32, %v2152_v7  ;;  %v2307_v12 = vadd.f32 %v2306_v34, %v2276_v54  ;;  %v2262_v32 = vld [vmem:[%s5201_s8 + $0xd0] sm:$0x3]  ;;  %v2248_v5 = vld [vmem:[%s5201_s8 + $0x60] sm:$0xff]  ;;  %v2249_v7 = vld [vmem:[%s5201_s8 + $0x68] sm:$0xff] }
 0x2e6   :  { %v1866_v17 = vpop.f32.mrb[42].mxu0  ;;  %v2126_v54 = vld [vmem:[%s5200_s7 + $0x70] sm:$0xff] }
 0x2e7   :  { %v2184_v26 = vadd.f32 %v2183_v4, %v2153_v3  ;;  %v2308_v11 = vadd.f32 %v2307_v12, %v2277_v2  ;;  %v2168_v27 = vmul.f32 %v2136_v22, %v1866_v17  ;;  %v2292_v36 = vmul.f32 %v2260_v45, %v1866_v17  ;;  %v1868_v63 = vpop.f32.mrb[43].mxu0  ;;  %v2250_v22 = vld [vmem:[%s5201_s8 + $0x70] sm:$0xff]  ;;  %v2127_v45 = vld [vmem:[%s5200_s7 + $0x78] sm:$0xff] }
 0x2e8   :  { %v2169_v15 = vmul.f32 %v2137_v50, %v1868_v63  ;;  %v2293_v59 = vmul.f32 %v2261_v8, %v1868_v63  ;;  %v2251_v4 = vld [vmem:[%s5201_s8 + $0x78] sm:$0xff]  ;;  %v2142_v17 = vld [vmem:[%s5200_s7 + $0xf0] sm:$0x3]  ;;  %v2140_v63 = vld [vmem:[%s5200_s7 + $0xe0] sm:$0x3] }
 0x2e9   :  { %v2208_v14 = vsel %vm1437_vm0, %v2168_v27, 0.0  ;;  %v2332_v0 = vsel %vm1437_vm0, %v2292_v36, 0.0 }
 0x2ea   :  { %v2209_v19 = vadd.f32 %v2208_v14, %v2207_v33  ;;  %v2333_v55 = vadd.f32 %v2332_v0, %v2331_v49  ;;  %v2210_v9 = vsel %vm1437_vm0, %v2169_v15, 0.0  ;;  %v2334_v20 = vsel %vm1437_vm0, %v2293_v59, 0.0  ;;  %v1937_v21 = vpop.f32.mrb[44].mxu0  ;;  %v2264_v15 = vld [vmem:[%s5201_s8 + $0xe0] sm:$0x3] }
 0x2eb   :  { %v2154_v23 = vmul.f32 %v2122_v18, %v1937_v21  ;;  %v2278_v24 = vmul.f32 %v2246_v53, %v1937_v21  ;;  %v1939_v25 = vpop.f32.mrb[45].mxu0  ;;  %v2266_v59 = vld [vmem:[%s5201_s8 + $0xf0] sm:$0x3]  ;;  %v2141_v14 = vld [vmem:[%s5200_s7 + $0xe8] sm:$0x3] }
 0x2ec   :  { %v2211_v41 = vadd.f32 %v2210_v9, %v2209_v19  ;;  %v2335_v28 = vadd.f32 %v2334_v20, %v2333_v55  ;;  %v2155_v29 = vmul.f32 %v2123_v48, %v1939_v25  ;;  %v2279_v30 = vmul.f32 %v2247_v10, %v1939_v25  ;;  %v2265_v0 = vld [vmem:[%s5201_s8 + $0xe8] sm:$0x3] }
 0x2ed   :  { %v2185_v34 = vadd.f32 %v2184_v26, %v2154_v23  ;;  %v2309_v35 = vadd.f32 %v2308_v11, %v2278_v24  ;;  %v2158_v48 = vmul.f32 %v2126_v54, %v4956_v56  ;;  %v2282_v10 = vmul.f32 %v2250_v22, %v4956_v56  ;;  %v2267_v56 = vld [vmem:[%s5201_s8 + $0xf8] sm:$0x3] }
 0x2ee   :  { %v1943_v46 = vpop.f32.mrb[46].mxu0  ;;  %v2159_v19 = vmul.f32 %v2127_v45, %v4958_v62  ;;  %v2283_v55 = vmul.f32 %v2251_v4, %v4958_v62 }
 0x2ef   :  { %v2186_v47 = vadd.f32 %v2185_v34, %v2155_v29  ;;  %v2310_v13 = vadd.f32 %v2309_v35, %v2279_v30  ;;  %v2170_v51 = vmul.f32 %v2138_v31, %v1943_v46  ;;  %v2294_v58 = vmul.f32 %v2262_v32, %v1943_v46  ;;  %v1945_v52 = vpop.f32.mrb[47].mxu0  ;;  %v2143_v29 = vld [vmem:[%s5200_s7 + $0xf8] sm:$0x3] }
 0x2f0   :  { %v2171_v16 = vmul.f32 %v2139_v37, %v1945_v52  ;;  %v2295_v60 = vmul.f32 %v2263_v38, %v1945_v52 }
 0x2f1   :  { %v2212_v1 = vsel %vm1437_vm0, %v2170_v51, 0.0  ;;  %v2336_v6 = vsel %vm1437_vm0, %v2294_v58, 0.0 }
 0x2f2   :  { %v2213_v39 = vadd.f32 %v2212_v1, %v2211_v41  ;;  %v2337_v33 = vadd.f32 %v2336_v6, %v2335_v28  ;;  %v2214_v49 = vsel %vm1437_vm0, %v2171_v16, 0.0  ;;  %v2338_v3 = vsel %vm1437_vm0, %v2295_v60, 0.0  ;;  %v2014_v2 = vpop.f32.mrb[48].mxu0 }
 0x2f3   :  { %v2156_v12 = vmul.f32 %v2124_v61, %v2014_v2  ;;  %v2280_v50 = vmul.f32 %v2248_v5, %v2014_v2  ;;  %v2016_v8 = vpop.f32.mrb[49].mxu0  ;;  %v2174_v41 = vmul.f32 %v2142_v17, %v4972_v42  ;;  %v2298_v28 = vmul.f32 %v2266_v59, %v4972_v42 }
 0x2f4   :  { %v2215_v26 = vadd.f32 %v2214_v49, %v2213_v39  ;;  %v2339_v11 = vadd.f32 %v2338_v3, %v2337_v33  ;;  %v2157_v27 = vmul.f32 %v2125_v40, %v2016_v8  ;;  %v2281_v36 = vmul.f32 %v2249_v7, %v2016_v8  ;;  %v2111_v33 = vpop.xlane.xlu1 %2110 }
 0x2f5   :  { %v2187_v18 = vadd.f32 %v2186_v47, %v2156_v12  ;;  %v2311_v53 = vadd.f32 %v2310_v13, %v2280_v50  ;;  %v2175_v47 = vmul.f32 %v2143_v29, %v4974_v57  ;;  %v2299_v13 = vmul.f32 %v2267_v56, %v4974_v57  ;;  %v2107_v57 = vpop.xlane.xlu0 %2106 }
 0x2f6   :  { %v2020_v9 = vpop.f32.mrb[50].mxu0  ;;  %v2220_v60 = vsel %vm1437_vm0, %v2174_v41, 0.0  ;;  %v2344_v61 = vsel %vm1437_vm0, %v2298_v28, 0.0  ;;  %v2355_v49 = vshrl.u32 %v32_v43, 7  ;;  %v2358_v2 = vadd.s32 4294967288, %v3561_v44 }
 0x2f7   :  { %v2188_v20 = vadd.f32 %v2187_v18, %v2157_v27  ;;  %v2312_v21 = vadd.f32 %v2311_v53, %v2281_v36  ;;  %v2172_v23 = vmul.f32 %v2140_v63, %v2020_v9  ;;  %v2296_v24 = vmul.f32 %v2264_v15, %v2020_v9  ;;  %v2022_v25 = vpop.f32.mrb[51].mxu0 }
 0x2f8   :  { %v2173_v30 = vmul.f32 %v2141_v14, %v2022_v25  ;;  %v2297_v62 = vmul.f32 %v2265_v0, %v2022_v25  ;;  %v2222_v6 = vsel %vm1437_vm0, %v2175_v47, 0.0  ;;  %v2346_v40 = vsel %vm1437_vm0, %v2299_v13, 0.0  ;;  %v2232_v22 = vpop.xlane.xlu1 %2231 }
 0x2f9   :  { %v2216_v31 = vsel %vm1437_vm0, %v2172_v23, 0.0  ;;  %v2340_v32 = vsel %vm1437_vm0, %v2296_v24, 0.0  ;;  %v2189_v34 = vadd.f32 %v2188_v20, %v2158_v48  ;;  %v2313_v35 = vadd.f32 %v2312_v21, %v2282_v10  ;;  %v2235_v39 = vpop.xlane.xlu0 %2234 }
 0x2fa   :  { %v2217_v37 = vadd.f32 %v2216_v31, %v2215_v26  ;;  %v2341_v38 = vadd.f32 %v2340_v32, %v2339_v11  ;;  %v2218_v42 = vsel %vm1437_vm0, %v2173_v30, 0.0  ;;  %v2342_v46 = vsel %vm1437_vm0, %v2297_v62, 0.0 }
 0x2fb   :  { %v2190_v51 = vadd.f32 %v2189_v34, %v2159_v19  ;;  %v2314_v58 = vadd.f32 %v2313_v35, %v2283_v55  ;;  %v2356_v45 = vsub.s32 %v3561_v44, %v2355_v49  ;;  %v2361_v12 = vsub.s32 %v2358_v2, %v2355_v49 }
 0x2fc   :  { %v2219_v52 = vadd.f32 %v2218_v42, %v2217_v37  ;;  %v2343_v16 = vadd.f32 %v2342_v46, %v2341_v38 }
 0x2fd   :  { %2191 = vadd.xlane.f32.xlu0 %v2190_v51  ;;  %2315 = vadd.xlane.f32.xlu1 %v2314_v58 }
 0x2fe   :  { %v2221_v5 = vadd.f32 %v2220_v60, %v2219_v52  ;;  %v2345_v1 = vadd.f32 %v2344_v61, %v2343_v16 }
 0x300   :  { %v2223_v7 = vadd.f32 %v2222_v6, %v2221_v5  ;;  %v2347_v54 = vadd.f32 %v2346_v40, %v2345_v1 }
 0x302   :  { %2224 = vadd.xlane.f32.xlu0 %v2223_v7 }
 0x306   :  { %2348 = vadd.xlane.f32.xlu0 %v2347_v54 }
 0x38a   :  { %v2192_v3 = vpop.xlane.xlu0 %2191  ;;  %v2316_v50 = vpop.xlane.xlu1 %2315 }
 0x38b   :  { %v2226_v4 = vadd.f32 %v2192_v3, %v2107_v57  ;;  %v2350_v11 = vadd.f32 %v2316_v50, %v2232_v22 }
 0x38d   :  { %v2357_v26 = vrot.slane %v2226_v4, %v2356_v45  ;;  %v2373_v43 = vrot.slane %v2350_v11, %v2356_v45 }
 0x38f   :  { %v2225_v8 = vpop.xlane.xlu0 %2224 }
 0x390   :  { %v2227_v17 = vadd.f32 %v2225_v8, %v2111_v33 }
 0x392   :  { %v2362_v27 = vrot.slane %v2227_v17, %v2361_v12 }
 0x393   :  { %v2349_v36 = vpop.xlane.xlu0 %2348 }
 0x394   :  { %v2364_v63 = vsel %vm2363_vm9, %v2362_v27, %v2357_v26  ;;  %v2351_v15 = vadd.f32 %v2349_v36, %v2235_v39 }
 0x395   :  { %2367 = vst.msk [vmem:[%s5202_s9] sm:$0x1] %vm2366_vm10, %v2364_v63 }
 0x396   :  { %v2377_v59 = vrot.slane %v2351_v15, %v2361_v12 }
 0x398   :  { %v2378_v44 = vsel %vm2363_vm9, %v2377_v59, %v2373_v43 }
 0x399   :  { %2380 = vst.msk [vmem:[%s5202_s9 + $0x1] sm:$0x1] %vm2366_vm10, %v2378_v44 }

</bundles_post_ra>
